<compile_context>
chip_gen: v7x
topology: tpu7x:2x2x1
jax: 0.10.0
libtpu: 0.0.40
codegen_flags: <defaults>
</compile_context>

<pallas_src>
import math
import functools

import jax
import jax.numpy as jnp
from jax import lax
from jax.experimental import pallas as pl
from jax.experimental.pallas import tpu as pltpu


# ---------------------------------------------------------------------------
# Kernels
# ---------------------------------------------------------------------------

def _qkv_attn_dense_kernel(q_ref, k_ref, v_ref, o_ref, *, scale2, exp_dtype):
    """Single-KV-block fast path: full softmax, no online statistics."""
    # q_ref/k_ref/v_ref: (C, T); o_ref: (C, T)
    q = q_ref[...]                                # (C, T), input dtype
    k = k_ref[...] * scale2                       # fold (1/sqrt(sqrt(C)))**2 once
    v = v_ref[...]

    # s[kv, t] = sum_c k[c, kv] * q[c, t]  -- contract C of both operands,
    # no operand transpose materialized; MXU accumulates in f32.
    s = lax.dot_general(k, q, dimension_numbers=(((0,), (0,)), ((), ())),
                        preferred_element_type=jnp.float32)        # (T, T) f32

    m = jnp.max(s, axis=0, keepdims=True)                          # (1, T)
    p = jnp.exp((s - m).astype(exp_dtype))                         # (T, T)
    l = jnp.sum(p, axis=0, keepdims=True, dtype=jnp.float32)       # (1, T) f32

    # a[c, t] = sum_kv v[c, kv] * p[kv, t]  -- result already in (C, T) layout.
    # Probabilities in the input dtype (matches torch softmax(...).type(...)).
    pv = lax.dot_general(v, p.astype(v.dtype),
                         dimension_numbers=(((1,), (0,)), ((), ())),
                         preferred_element_type=jnp.float32)       # (C, T) f32

    inv_l = pl.reciprocal(l, approx=True)          # EUP slot
    inv_l = inv_l * (2.0 - l * inv_l)              # one Newton step -> ~f32 accurate
    o_ref[...] = (pv * inv_l).astype(o_ref.dtype)


def _qkv_attn_flash_kernel(q_ref, k_ref, v_ref, o_ref, m_ref, l_ref, acc_ref,
                           *, scale2, exp_dtype):
    """Online-softmax path over a tiled KV axis (trailing 'arbitrary' grid dim)."""
    # q_ref: (C, T) resident; k_ref/v_ref: (C, T_kv) tiles; o_ref: (C, T) resident.
    j = pl.program_id(2)

    @pl.when(j == 0)
    def _():
        m_ref[...] = jnp.full_like(m_ref, -jnp.inf)
        l_ref[...] = jnp.zeros_like(l_ref)
        acc_ref[...] = jnp.zeros_like(acc_ref)

    q = q_ref[...]                                # never re-scaled (resident block)
    k = k_ref[...] * scale2                       # O(C*tkv) per step
    v = v_ref[...]

    s = lax.dot_general(k, q, dimension_numbers=(((0,), (0,)), ((), ())),
                        preferred_element_type=jnp.float32)        # (T_kv, T) f32

    # Online softmax over the KV (sublane) axis; stats are (1, T) and broadcast
    # along sublanes -- no lane<->sublane moves anywhere.
    m_prev = m_ref[...]
    m_new = jnp.maximum(m_prev, jnp.max(s, axis=0, keepdims=True))
    alpha = jnp.exp(m_prev - m_new)                                 # (1, T)
    p = jnp.exp((s - m_new).astype(exp_dtype))                      # (T_kv, T)

    l_ref[...] = alpha * l_ref[...] + jnp.sum(p, axis=0, keepdims=True,
                                              dtype=jnp.float32)
    m_ref[...] = m_new

    pv = lax.dot_general(v, p.astype(v.dtype),
                         dimension_numbers=(((1,), (0,)), ((), ())),
                         preferred_element_type=jnp.float32)        # (C, T) f32
    acc_ref[...] = alpha * acc_ref[...] + pv

    @pl.when(j == pl.num_programs(2) - 1)
    def _():
        l = l_ref[...]
        inv_l = pl.reciprocal(l, approx=True)
        inv_l = inv_l * (2.0 - l * inv_l)
        o_ref[...] = (acc_ref[...] * inv_l).astype(o_ref.dtype)


# ---------------------------------------------------------------------------
# Hardware-aware sizing helpers
# ---------------------------------------------------------------------------

def _vmem_capacity_bytes() -> int:
    """Physical VMEM of the current chip (fallbacks are conservative)."""
    try:
        cap = getattr(pltpu.get_tpu_info(), "vmem_capacity_bytes", None)
        if cap:
            return int(cap)
    except Exception:
        pass
    try:
        kind = jax.devices()[0].device_kind.lower()
    except Exception:
        kind = ""
    if ("v5" in kind) or ("v6" in kind):
        return 128 << 20
    return 64 << 20            # v7x and unknown: assume the small-VMEM chip


def _has_bf16_eup() -> bool:
    """bf16 exp path is only profitable/legal on v6e/v7x (not v5e)."""
    try:
        kind = jax.devices()[0].device_kind.lower()
    except Exception:
        return False
    return ("v6" in kind) or ("v7" in kind)


def _footprint_bytes(ch: int, length: int, tkv: int, itemsize: int,
                     tiled: bool) -> int:
    dbuf = 2                                              # pipeline double-buffering
    io = dbuf * itemsize * ch * (2 * length + 2 * tkv)    # q + out + k + v blocks
    scratch = 4 * (ch * length + 2 * 8 * length) if tiled else 0   # acc + padded m,l
    temps = 3 * 4 * tkv * length                          # f32 scores/exp/probs
    return io + scratch + temps + (4 << 20)               # headroom


def _choose_kv_block(ch: int, length: int, itemsize: int, budget: int) -> int:
    """Largest lane-aligned KV tile that divides T and fits the VMEM budget."""
    if length % 128 != 0:
        # TODO(synk): ragged T (not a multiple of 128) would need pl.BoundedSlice
        # tiling; fall back to a single dense block.
        return length
    if _footprint_bytes(ch, length, length, itemsize, tiled=False) <= budget:
        return length                                     # dense fast path
    candidates = [c for c in (2048, 1024, 512, 256, 128)
                  if c < length and length % c == 0]
    for blk in candidates:
        if _footprint_bytes(ch, length, blk, itemsize, tiled=True) <= budget:
            return blk
    return candidates[-1] if candidates else length


# ---------------------------------------------------------------------------
# Wrapper
# ---------------------------------------------------------------------------

def _attention_xla(qkv: jax.Array, n_heads: int) -> jax.Array:
    """Dense XLA path, mirrors the PyTorch forward (used for T < 128 / reference)."""
    bs, width, length = qkv.shape
    ch = width // (3 * n_heads)
    hc = n_heads * ch
    q = qkv[:, 0 * hc:1 * hc, :].reshape(bs * n_heads, ch, length)
    k = qkv[:, 1 * hc:2 * hc, :].reshape(bs * n_heads, ch, length)
    v = qkv[:, 2 * hc:3 * hc, :].reshape(bs * n_heads, ch, length)
    scale = 1.0 / math.sqrt(math.sqrt(ch))
    w = jnp.einsum('bct,bcs->bts', q * scale, k * scale,
                   precision=lax.Precision.HIGHEST)
    w = jax.nn.softmax(w.astype(jnp.float32), axis=-1).astype(w.dtype)
    a = jnp.einsum('bts,bcs->bct', w, v, precision=lax.Precision.HIGHEST)
    return a.reshape(bs, -1, length)


def qkv_attention(qkv: jax.Array, n_heads: int, *, kv_block: int | None = None,
                  min_pallas_length: int = 128) -> jax.Array:
    """Pallas implementation of QKVAttention.forward.

    qkv: [N, 3*H*C, T]  ->  returns [N, H*C, T]
    """
    bs, width, length = qkv.shape
    assert width % (3 * n_heads) == 0
    ch = width // (3 * n_heads)
    itemsize = qkv.dtype.itemsize
    packing = max(1, 4 // itemsize)          # 1 for f32, 2 for bf16, 4 for int8/fp8
    # Channel-block offsets h*ch, (H+h)*ch, (2H+h)*ch must land on packed-sublane
    # boundaries or every q/k/v block load pays a Mosaic relayout.
    assert ch % (8 * packing) == 0, (
        "per-head channel count must be a multiple of the packed sublane tile")

    if length < min_pallas_length:
        # Lane axis < 128: every vreg, matmul N dim, and store runs <=50%
        # lane-utilized in Pallas -- dense XLA is faster here.
        return _attention_xla(qkv, n_heads)

    scale2 = 1.0 / math.sqrt(ch)             # == (1/sqrt(sqrt(ch)))**2, one-sided fold
    capacity = _vmem_capacity_bytes()
    budget = max(min(capacity - (16 << 20), 100 << 20), 32 << 20)

    tkv = kv_block if kv_block is not None else _choose_kv_block(
        ch, length, itemsize, budget)
    assert length % tkv == 0
    num_kv = length // tkv
    hc = n_heads * ch

    exp_dtype = (jnp.bfloat16
                 if (qkv.dtype == jnp.bfloat16 and _has_bf16_eup())
                 else jnp.float32)

    # q/k/v channel-block indices inside qkv's 3*H*C axis: h, H + h, 2H + h.
    # TODO(synk): on v7x, if bs*n_heads is odd (e.g. single-image, 1 head) one
    # TensorCore idles; split the query/T axis into an extra "parallel" dim there.
    if num_kv == 1:
        grid = (bs, n_heads)
        in_specs = [
            pl.BlockSpec((None, ch, length), lambda n, h: (n, h, 0)),
            pl.BlockSpec((None, ch, length), lambda n, h: (n, n_heads + h, 0)),
            pl.BlockSpec((None, ch, length), lambda n, h: (n, 2 * n_heads + h, 0)),
        ]
        out_spec = pl.BlockSpec((None, ch, length), lambda n, h: (n, h, 0))
        kernel = functools.partial(_qkv_attn_dense_kernel,
                                   scale2=scale2, exp_dtype=exp_dtype)
        scratch_shapes = []
        semantics = ("parallel", "parallel")
    else:
        grid = (bs, n_heads, num_kv)
        in_specs = [
            pl.BlockSpec((None, ch, length), lambda n, h, j: (n, h, 0)),
            pl.BlockSpec((None, ch, tkv), lambda n, h, j: (n, n_heads + h, j)),
            pl.BlockSpec((None, ch, tkv), lambda n, h, j: (n, 2 * n_heads + h, j)),
        ]
        out_spec = pl.BlockSpec((None, ch, length), lambda n, h, j: (n, h, 0))
        kernel = functools.partial(_qkv_attn_flash_kernel,
                                   scale2=scale2, exp_dtype=exp_dtype)
        scratch_shapes = [
            pltpu.VMEM((1, length), jnp.float32),      # m: running max
            pltpu.VMEM((1, length), jnp.float32),      # l: running denominator
            pltpu.VMEM((ch, length), jnp.float32),     # acc: running PV sum
        ]
        semantics = ("parallel", "parallel", "arbitrary")

    vmem_limit = int(min(max(_footprint_bytes(ch, length, tkv, itemsize,
                                              tiled=(num_kv > 1)),
                             32 << 20),
                         budget))

    out = pl.pallas_call(
        kernel,
        out_shape=jax.ShapeDtypeStruct((bs, hc, length), qkv.dtype),
        grid_spec=pltpu.PrefetchScalarGridSpec(
            num_scalar_prefetch=0,
            grid=grid,
            in_specs=in_specs,
            out_specs=out_spec,
            scratch_shapes=scratch_shapes,
        ),
        compiler_params=pltpu.CompilerParams(
            dimension_semantics=semantics,
            vmem_limit_bytes=vmem_limit,
        ),
    )(qkv, qkv, qkv)        # same HBM buffer, three block views -> no wrapper copies

    return out


# ---------------------------------------------------------------------------
# Self-test
# ---------------------------------------------------------------------------

if __name__ == "__main__":
    # Small shapes consistent with the module: N=2, H=2, C=32 channels/head,
    # T=256 positions (a 16x16 DDPM feature map -> lane-dense, num_kv==1 path).
    n_heads = 2
    bs, ch, length = 2, 32, 256
    width = 3 * n_heads * ch                       # 192

    key = jax.random.PRNGKey(0)
    qkv = jax.random.normal(key, (bs, width, length), dtype=jnp.float32)

    ref = _attention_xla(qkv, n_heads)

    # 1) dense (num_kv == 1) fast path.
    out = jax.block_until_ready(qkv_attention(qkv, n_heads))
    assert out.shape == (bs, n_heads * ch, length)
    assert jnp.allclose(out, ref, atol=2e-4, rtol=2e-4), float(
        jnp.max(jnp.abs(out - ref)))

    # 2) forced KV tiling -> online-softmax (flash) path.
    out_t = jax.block_until_ready(qkv_attention(qkv, n_heads, kv_block=128))
    assert jnp.allclose(out_t, ref, atol=2e-4, rtol=2e-4), float(
        jnp.max(jnp.abs(out_t - ref)))

    # 3) lane-starved T < 128 dispatches to the dense XLA path.
    qkv_small = jax.random.normal(jax.random.PRNGKey(1), (bs, width, 64),
                                  dtype=jnp.float32)
    out_s = jax.block_until_ready(qkv_attention(qkv_small, n_heads))
    assert out_s.shape == (bs, n_heads * ch, 64)
    assert jnp.allclose(out_s, _attention_xla(qkv_small, n_heads),
                        atol=2e-4, rtol=2e-4)

    print("KERNEL_OK")
</pallas_src>

<mosaic_0001>
module attributes {stable_mosaic.version = 11 : i64} {
  func.func @_qkv_attn_dense_kernel(%arg0: i32, %arg1: i32, %arg2: memref<1x32x256xf32, #tpu.memory_space<vmem>>, %arg3: memref<1x32x256xf32, #tpu.memory_space<vmem>>, %arg4: memref<1x32x256xf32, #tpu.memory_space<vmem>>, %arg5: memref<1x32x256xf32, #tpu.memory_space<vmem>>) attributes {dimension_semantics = [#tpu.dimension_semantics<parallel>, #tpu.dimension_semantics<parallel>], iteration_bounds = array<i64: 2, 2>, scalar_prefetch = 0 : i64, scratch_operands = 0 : i64, tpu.core_type = #tpu.core_type<tc>, window_params = [{transform_indices = @transform_0, window_bounds = array<i64: 1, 32, 256>}, {transform_indices = @transform_1, window_bounds = array<i64: 1, 32, 256>}, {transform_indices = @transform_2, window_bounds = array<i64: 1, 32, 256>}, {transform_indices = @transform_3, window_bounds = array<i64: 1, 32, 256>}]} {
    %c0 = arith.constant 0 : index
    %c0_0 = arith.constant 0 : index
    %c0_1 = arith.constant 0 : index
    %0 = vector.load %arg2[%c0, %c0_0, %c0_1] : memref<1x32x256xf32, #tpu.memory_space<vmem>>, vector<1x32x256xf32>
    %1 = vector.shape_cast %0 : vector<1x32x256xf32> to vector<32x256xf32>
    %c0_2 = arith.constant 0 : index
    %c0_3 = arith.constant 0 : index
    %c0_4 = arith.constant 0 : index
    %2 = vector.load %arg3[%c0_2, %c0_3, %c0_4] : memref<1x32x256xf32, #tpu.memory_space<vmem>>, vector<1x32x256xf32>
    %3 = vector.shape_cast %2 : vector<1x32x256xf32> to vector<32x256xf32>
    %cst = arith.constant 0.176776692 : f32
    %4 = vector.broadcast %cst : f32 to vector<32x256xf32>
    %5 = arith.mulf %3, %4 : vector<32x256xf32>
    %c0_5 = arith.constant 0 : index
    %c0_6 = arith.constant 0 : index
    %c0_7 = arith.constant 0 : index
    %6 = vector.load %arg4[%c0_5, %c0_6, %c0_7] : memref<1x32x256xf32, #tpu.memory_space<vmem>>, vector<1x32x256xf32>
    %7 = vector.shape_cast %6 : vector<1x32x256xf32> to vector<32x256xf32>
    %cst_8 = arith.constant dense<0.000000e+00> : vector<256x256xf32>
    %8 = tpu.matmul %5, %1, %cst_8 {dimension_numbers = #tpu.dot_dimension_numbers<[0], [0], [1], [1], [0, 1, 1, 1], [], []>} : vector<32x256xf32>, vector<32x256xf32>, vector<256x256xf32> -> vector<256x256xf32>
    %cst_9 = arith.constant dense<0xFF800000> : vector<256xf32>
    %9 = vector.multi_reduction <maximumf>, %8, %cst_9 [0] : vector<256x256xf32> to vector<256xf32>
    %10 = vector.shape_cast %9 : vector<256xf32> to vector<1x256xf32>
    %11 = vector.broadcast %10 : vector<1x256xf32> to vector<256x256xf32>
    %12 = arith.subf %8, %11 : vector<256x256xf32>
    %13 = math.exp %12 : vector<256x256xf32>
    %cst_10 = arith.constant dense<0.000000e+00> : vector<256xf32>
    %14 = vector.multi_reduction <add>, %13, %cst_10 [0] : vector<256x256xf32> to vector<256xf32>
    %15 = vector.shape_cast %14 : vector<256xf32> to vector<1x256xf32>
    %cst_11 = arith.constant dense<0.000000e+00> : vector<32x256xf32>
    %16 = tpu.matmul %7, %13, %cst_11 {dimension_numbers = #tpu.dot_dimension_numbers<[1], [0], [0], [1], [0, 0, 1, 1], [], []>} : vector<32x256xf32>, vector<256x256xf32>, vector<32x256xf32> -> vector<32x256xf32>
    %17 = tpu.reciprocal %15 {approx = true} : vector<1x256xf32> -> vector<1x256xf32>
    %18 = arith.mulf %15, %17 : vector<1x256xf32>
    %cst_12 = arith.constant 2.000000e+00 : f32
    %19 = vector.broadcast %cst_12 : f32 to vector<1x256xf32>
    %20 = arith.subf %19, %18 : vector<1x256xf32>
    %21 = arith.mulf %17, %20 : vector<1x256xf32>
    %22 = vector.broadcast %21 : vector<1x256xf32> to vector<32x256xf32>
    %23 = arith.mulf %16, %22 : vector<32x256xf32>
    %c0_13 = arith.constant 0 : index
    %c0_14 = arith.constant 0 : index
    %c0_15 = arith.constant 0 : index
    %24 = vector.load %arg5[%c0_13, %c0_14, %c0_15] : memref<1x32x256xf32, #tpu.memory_space<vmem>>, vector<1x32x256xf32>
    %25 = vector.shape_cast %24 : vector<1x32x256xf32> to vector<32x256xf32>
    %26 = vector.shape_cast %23 : vector<32x256xf32> to vector<1x32x256xf32>
    tpu.vector_store %arg5[%c0_13, %c0_14, %c0_15], %26 {strides = array<i32>} : memref<1x32x256xf32, #tpu.memory_space<vmem>>, vector<1x32x256xf32>,
    return
  }
  func.func @transform_0(%arg0: i32, %arg1: i32) -> (i32, i32, i32) {
    %c0_i32 = arith.constant 0 : i32
    %c0_i32_0 = arith.constant 0 : i32
    return %arg0, %arg1, %c0_i32 : i32, i32, i32
  }
  func.func @transform_1(%arg0: i32, %arg1: i32) -> (i32, i32, i32) {
    %c2_i32 = arith.constant 2 : i32
    %0 = arith.addi %c2_i32, %arg1 : i32
    %c0_i32 = arith.constant 0 : i32
    %c0_i32_0 = arith.constant 0 : i32
    return %arg0, %0, %c0_i32 : i32, i32, i32
  }
  func.func @transform_2(%arg0: i32, %arg1: i32) -> (i32, i32, i32) {
    %c4_i32 = arith.constant 4 : i32
    %0 = arith.addi %c4_i32, %arg1 : i32
    %c0_i32 = arith.constant 0 : i32
    %c0_i32_0 = arith.constant 0 : i32
    return %arg0, %0, %c0_i32 : i32, i32, i32
  }
  func.func @transform_3(%arg0: i32, %arg1: i32) -> (i32, i32, i32) {
    %c0_i32 = arith.constant 0 : i32
    %c0_i32_0 = arith.constant 0 : i32
    return %arg0, %arg1, %c0_i32 : i32, i32, i32
  }
}

</mosaic_0001>

<bundles_post_ra>
// kernel: tpu_custom_call.1
= control target key start
LH: loop header
LB: loop body
LE: loop exit
PB: predicated region body
PF: predicated region fallthrough
CT: control target
= control target key end

     0   :  { %s3206_s0 = inlined_call_operand.hbm [shape: f32[2,192,256], index: 0, kind: input, shape index: {}]   ;;  %s3207_s1 = inlined_call_operand.hbm [shape: f32[2,192,256], index: 1, kind: input, shape index: {}]   ;;  %s3208_s2 = inlined_call_operand.hbm [shape: f32[2,192,256], index: 2, kind: input, shape index: {}]   ;;  %s3209_s3 = inlined_call_operand.hbm [shape: f32[2,64,256], index: 3, kind: output, shape index: {}]  }
   0x1   :  { %3270 = sst [smem:[#allocation43_spill]] %s3206_s0 }
   0x2   :  { %3271 = sst [smem:[#allocation44_spill]] %s3207_s1 }
   0x3   :  { %3272 = sst [smem:[#allocation45_spill]] %s3209_s3 }
   0x4   :  { %8 = vsyncpa [#allocation3], 0 }
   0x5   :  { %10 = vsyncpa [#allocation3 + $0x1], 0 }
   0x6   :  { %11 = vsyncpa [#allocation6], 0 }
   0x7   :  { %13 = vsyncpa [#allocation6 + $0x1], 0 }
   0x8   :  { %14 = vsyncpa [#allocation4], 0 }
   0x9   :  { %16 = vsyncpa [#allocation4 + $0x1], 0  ;;  %s2051_s12 = smov 0   ;;  %s2053_s13 = smov 0  }
   0xa   :  { %s2055_s14 = smov 0   ;;  %s2057_s15 = smov 0  }
   0xb   :  { %s2059_s16 = smov 0   ;;  %s2061_s17 = smov 0  }
   0xc   :  { %s2063_s18 = smov 0   ;;  %s2065_s19 = smov 0  }
   0xd   :  { %s2067_s20 = smov 0   ;;  %s2069_s21 = smov 0  }
   0xe   :  { %s2071_s22 = smov 0   ;;  %s2073_s23 = smov 0  }
   0xf   :  { %s2075_s24 = smov 0   ;;  %s2077_s25 = smov 0  }
  0x10 LB: > { %3273 = sst [smem:[#allocation13_spill]] %s1984_s16  ;;  %s2122_s26 = sadd.s32 4294967295, %s2020_s25   ;;  %s2020_s25 = sphi %s2077_s25, %s22_s25   ;;  %s2016_s24 = sphi %s2075_s24, %s3425_s24   ;;  %s2012_s23 = sphi %s2073_s23, %s3424_s23   ;;  %s2008_s22 = sphi %s2071_s22, %s3423_s22   ;;  %s2004_s21 = sphi %s2069_s21, %s3422_s21   ;;  %s2000_s20 = sphi %s2067_s20, %s3433_s20   ;;  %s1996_s19 = sphi %s2065_s19, %s3432_s19   ;;  %s1992_s18 = sphi %s2063_s18, %s3431_s18   ;;  %s1988_s17 = sphi %s2061_s17, %s3430_s17   ;;  %s1984_s16 = sphi %s2059_s16, %s3429_s16   ;;  %s1980_s15 = sphi %s2057_s15, %s3419_s15   ;;  %s1976_s14 = sphi %s2055_s14, %s3428_s14   ;;  %s1972_s13 = sphi %s2053_s13, %s3427_s13   ;;  %s1968_s12 = sphi %s2051_s12, %s3426_s12  }
  0x11   : > { %3274 = sst [smem:[#allocation14_spill]] %s2004_s21  ;;  %s31_s27 = sadd.s32 1, %s2012_s23 }
  0x12   : > { %3275 = sst [smem:[#allocation15_spill]] %s2008_s22  ;;  %p32_p0 = scmp.ge.s32.totalorder %s31_s27, 2 }
  0x13   : > { %3276 = sst [smem:[#allocation16_spill]] %s2012_s23  ;;  %s34_s28 = sadd.s32 1, %s2016_s24 }
  0x14   : > { %3277 = sst [smem:[#allocation17_spill]] %s2016_s24  ;;  %p3217_p1 = scmp.eq.s32.totalorder %s2020_s25, 0 }
  0x15   : > { %p3216_p2 = scmp.eq.s32.totalorder %s2122_s26, 0  ;;  %s3435_s27 = smov (%p32_p0, %s31_s27), 0 }
  0x16   : > { %3278 = sst [smem:[#allocation18_spill]] %s3435_s27  ;;  %s3437_s28 = smov (!%p32_p0, %s34_s28), %s2016_s24 }
  0x17   : > { %s66_s29 = sadd.s32 2, %s2012_s23  ;;  %s67_s30 = sadd.s32 2, %s3435_s27 }
  0x18   : > { %p36_p3 = scmp.ge.s32.totalorder %s3437_s28, 2  ;;  %s69_s4 = ssub.s32 %s66_s29, %s67_s30 }
  0x19   : > { %s73_s5 = sadd.s32 1, %s1988_s17  ;;  %p80_p4 = scmp.ne.s32.totalorder %s1988_s17, %s1984_s16 }
  0x1a   : > { %s3439_s28 = smov (%p36_p3, %s3437_s28), 0  ;;  %p86_p6 = scmp.ne.s32.totalorder %s1984_s16, %s1980_s15 }
  0x1b   : > { %3279 = sst [smem:[#allocation19_spill]] %s3439_s28  ;;  %p2140_p5 = por %p80_p4, %p3217_p1 }
  0x1c   : > { %s2148_s7 = ssub.s32 %s2016_s24, %s3439_s28  ;;  %s96_s8 = sadd.s32 4, %s2012_s23 }
  0x1d   : > { %s70_s9 = sor.u32 %s69_s4, %s2148_s7  ;;  %p2154_p7 = por %p86_p6, %p3216_p2 }
  0x1e   : > { %p71_p8 = scmp.eq.s32.totalorder %s70_s9, 0  ;;  %s97_s11 = sadd.s32 4, %s3435_s27 }
  0x1f   : > { %s3281_s10 = scalar_select %p2154_p7, 1, 0 }
  0x20   : > { %s99_s29 = ssub.s32 %s96_s8, %s97_s11  ;;  %p3215_p9 = scmp.lt.s32.totalorder %s2020_s25, 4 }
  0x21   : > { %3282 = sst [smem:[#allocation20_spill]] %s3281_s10  ;;  %s100_s15 = sor.u32 %s99_s29, %s2148_s7 }
  0x22   : > { %s2160_s30 = scalar_select %p71_p8, %s1988_s17, %s73_s5  }
  0x23   : > { %p2164_p10 = scmp.eq.s32.totalorder %s100_s15, 0  ;;  %s1426_s4 = sshll.u32 %s2012_s23, 3 }
  0x24   : > { %3283 = sst [smem:[#allocation21_spill]] %s2160_s30  ;;  %s1500_s3 = smul.u32 48, %s2016_s24 }
  0x25   : > { %s192_s22 = sand.u32 1, %s2020_s25   ;;  %s194_s8 = sand.u32 1, %s1988_s17  }
  0x26   : > { %s179_s21 = sadd.s32 %s1500_s3, %s1426_s4  ;;  %s1376_s9 = sshll.u32 %s194_s8, 6 }
  0x27   : > { %s2171_s10 = sshll.u32 %s179_s21, 7  ;;  %s3285_s1 = sld [smem:[#allocation44_spill]] }
  0x28   : > { %s196_s15 = scalar_lea.vmem [#allocation5], %s1376_s9  ;;  %p2184_p11 = pnand %p3215_p9, %p2140_p5 }
  0x29   : > { %s207_s16 = sshll.u32 %s196_s15, 4  ;;  %s2192_s21 = scalar_lea.sflag [#allocation6], %s192_s22  ;;  %s2188_s16 = int_to_ptr.vmem [resolvable:$true] %s207_s16 }
  0x2a   : > { %p1776_p3 = pneg %p2184_p11 }
  0x2d   : > { %s1272_s29 = scalar_lea.hbm %s3285_s1, %s2171_s10  ;;  %s1779_s9 = scalar_lea.hbm %s3285_s1, 12288 }
  0x2e   : > { %s2178_s30 = scalar_lea.hbm %s1272_s29, 2048  ;;  %s1804_s4 = scalar_lea.hbm %s1272_s29, 3072 }
  0x2f   : > { %p1775_p0 = scmp.ne.s32.totalorder %s2178_s30, %s1804_s4  ;;  %p1780_p5 = scmp.lt.u32.totalorder %s2178_s30, %s3285_s1 }
  0x30   : > { %p1781_p8 = scmp.lt.u32.totalorder %s1779_s9, %s1804_s4  ;;  %p1783_p2 = scmp.lt.u32.totalorder %s1804_s4, %s2178_s30 }
  0x31   : > { %p1777_p4 = pnand %p1776_p3, %p1775_p0 }
  0x32   : > { %p1782_p9 = por %p1781_p8, %p1780_p5 }
  0x33   : > { %p1778_p6 = pneg %p1777_p4 }
  0x34   : > { %p1784_p1 = por %p1783_p2, %p1782_p9 }
  0x36   : > { %p1785_p12 = pnand %p1784_p1, %p1778_p6 }
  0x38   : > { %1788 = shalt.err (!%p1785_p12)
}
  0x39   : > { %s1789_s22 = scalar_lea.vmem %s2188_s16, 1024  ;;  %s2022_s29 = smov [#allocation5]  }
  0x3a   : > { %p1790_p0 = scmp.ne.s32.totalorder %s2188_s16, %s1789_s22  ;;  %s1794_s15 = sshll.u32 %s2022_s29, 4  ;;  %s1795_s15 = int_to_ptr.vmem [resolvable:$false] %s1794_s15 }
  0x3b   : > { %s1796_s6 = scalar_lea.vmem %s1795_s15, 2048  ;;  %p1797_p7 = scmp.lt.s32.totalorder %s2188_s16, %s1795_s15 }
  0x3c   : > { %p1792_p4 = pnand %p1790_p0, %p1776_p3  ;;  %p1798_p5 = scmp.lt.s32.totalorder %s1796_s6, %s1789_s22 }
  0x3e   : > { %p1793_p13 = pneg %p1792_p4  ;;  %p1799_p8 = por %p1798_p5, %p1797_p7 }
  0x40   : > { %p1800_p2 = pnand %p1799_p8, %p1793_p13 }
  0x42   : > { %1803 = shalt.err (!%p1800_p2)
}
  0x43   : > { %s3219_s4 = smov 256   ;;  %s3221_s8 = smov 16  }
  0x44   : > { %1515 = dma.hbm_to_vmem [thread:$0]  (!%p2184_p11), %s2178_s30, 1024, %s2188_s16, %s2192_s21, %s3219_s4, %s3219_s4, %s3221_s8  }
  0x45   : > { %p3287_p1 = scmp.lt.s32.totalorder %s2020_s25, 5  ;;  %p3288_p7 = scmp.ge.s32.totalorder %s2020_s25, 1 }
  0x46   : > { %s1369_s11 = sadd.s32 4294967294, %s2020_s25   ;;  %s39_s5 = ssub.s32 %s2012_s23, %s3435_s27 }
  0x47   : > { %p2226_p9 = pnand %p3288_p7, %p3287_p1  ;;  %s43_s22 = sadd.s32 1, %s2000_s20 }
  0x48   : > { %s40_s29 = sor.u32 %s39_s5, %s2148_s7  ;;  %p50_p12 = scmp.ne.s32.totalorder %s2000_s20, %s1996_s19 }
  0x49   : > { %s3289_s9 = scalar_select %p2226_p9, 1, 0 }
  0x4a   : > { %p41_p13 = scmp.eq.s32.totalorder %s40_s29, 0  ;;  %p56_p3 = scmp.ne.s32.totalorder %s1996_s19, %s1992_s18 }
  0x4b   : > { %p3290_p6 = scmp.eq.s32.totalorder %s2020_s25, 0  ;;  %p142_p11 = scmp.eq.s32.totalorder %s2122_s26, 3 }
  0x4c   : > { %s2247_s16 = scalar_select %p41_p13, %s2000_s20, %s43_s22  }
  0x4d   : > { %p2241_p0 = por %p3290_p6, %p50_p12  ;;  %p3292_p4 = scmp.eq.s32.totalorder %s2122_s26, 0 }
  0x4e   : > { %p2255_p8 = por %p142_p11, %p50_p12  ;;  %p148_p2 = scmp.eq.s32.totalorder %s1369_s11, 3 }
  0x4f   : > { %p2251_p5 = por %p3292_p4, %p56_p3  ;;  %s168_s15 = sand.u32 1, %s2000_s20  }
  0x50   : > { %s3294_s7 = scalar_select %p2255_p8, 1, 0 }
  0x51   : > { %s3293_s30 = scalar_select %p2251_p5, 1, 0 }
  0x52   : > { %s1372_s6 = sshll.u32 %s168_s15, 6  ;;  %p2260_p1 = por %p148_p2, %p56_p3 }
  0x53   : > { %s3296_s0 = sld [smem:[#allocation43_spill]]  ;;  %s172_s8 = scalar_lea.vmem [#allocation2], %s1372_s6 }
  0x54   : > { %s3295_s5 = scalar_select %p2260_p1, 1, 0 }
  0x55   : > { %s182_s1 = sshll.u32 %s172_s8, 4  ;;  %p3297_p7 = scmp.lt.s32.totalorder %s2020_s25, 4  ;;  %s2270_s1 = int_to_ptr.vmem [resolvable:$true] %s182_s1 }
  0x56   : > { %s2280_s27 = scalar_lea.sflag [#allocation3], %s168_s15 }
  0x57   : > { %p2276_p12 = pnand %p3297_p7, %p2241_p0 }
  0x59   : > { %s2268_s22 = scalar_lea.hbm %s3296_s0, %s2171_s10  ;;  %p1807_p3 = pneg %p2276_p12 }
  0x5a   : > { %s1805_s4 = scalar_lea.hbm %s2268_s22, 1024  ;;  %s1810_s3 = scalar_lea.hbm %s3296_s0, 12288 }
  0x5b   : > { %p1806_p13 = scmp.ne.s32.totalorder %s2268_s22, %s1805_s4  ;;  %p1811_p0 = scmp.lt.u32.totalorder %s2268_s22, %s3296_s0 }
  0x5c   : > { %p1812_p4 = scmp.lt.u32.totalorder %s1810_s3, %s1805_s4  ;;  %p1814_p7 = scmp.lt.u32.totalorder %s1805_s4, %s2268_s22 }
  0x5d   : > { %p1808_p6 = pnand %p1807_p3, %p1806_p13 }
  0x5e   : > { %p1813_p2 = por %p1812_p4, %p1811_p0 }
  0x5f   : > { %p1809_p11 = pneg %p1808_p6 }
  0x60   : > { %p1815_p1 = por %p1814_p7, %p1813_p2 }
  0x62   : > { %p1816_p8 = pnand %p1815_p1, %p1809_p11 }
  0x64   : > { %1819 = shalt.err (!%p1816_p8)
}
  0x65   : > { %s1820_s15 = scalar_lea.vmem %s2270_s1, 1024  ;;  %s2025_s8 = smov [#allocation2]  }
  0x66   : > { %p1821_p13 = scmp.ne.s32.totalorder %s2270_s1, %s1820_s15  ;;  %s1825_s6 = sshll.u32 %s2025_s8, 4  ;;  %s1826_s6 = int_to_ptr.vmem [resolvable:$false] %s1825_s6 }
  0x67   : > { %s1827_s24 = scalar_lea.vmem %s1826_s6, 2048  ;;  %p1828_p9 = scmp.lt.s32.totalorder %s2270_s1, %s1826_s6 }
  0x68   : > { %p1823_p6 = pnand %p1821_p13, %p1807_p3  ;;  %p1829_p0 = scmp.lt.s32.totalorder %s1827_s24, %s1820_s15 }
  0x6a   : > { %p1824_p5 = pneg %p1823_p6  ;;  %p1830_p4 = por %p1829_p0, %p1828_p9 }
  0x6c   : > { %p1831_p2 = pnand %p1830_p4, %p1824_p5 }
  0x6e   : > { %1834 = shalt.err (!%p1831_p2)
}
  0x6f   : > { %s3299_s4 = smov 16   ;;  %s3300_s3 = smov 256  }
  0x70   : > { %1512 = dma.hbm_to_vmem [thread:$0]  (!%p2276_p12), %s2268_s22, 1024, %s2270_s1, %s2280_s27, %s3300_s3, %s3300_s3, %s3299_s4  }
  0x71   : > { %s103_s11 = sadd.s32 1, %s1976_s14  ;;  %p110_p9 = scmp.ne.s32.totalorder %s1976_s14, %s1972_s13 }
  0x72   : > { %s2315_s29 = scalar_select %p2164_p10, %s1976_s14, %s103_s11  }
  0x73   : > { %p116_p5 = scmp.ne.s32.totalorder %s1972_s13, %s1968_s12  ;;  %s219_s15 = sand.u32 1, %s1976_s14  }
  0x74   : > { %s1281_s24 = scalar_lea.hbm %s3208_s2, %s2171_s10  ;;  %p3301_p8 = scmp.eq.s32.totalorder %s2020_s25, 0 }
  0x75   : > { %p3302_p3 = scmp.eq.s32.totalorder %s2122_s26, 0  ;;  %s1379_s23 = sshll.u32 %s219_s15, 6 }
  0x76   : > { %p112_p1 = por %p110_p9, %p3301_p8  ;;  %s2334_s1 = scalar_lea.hbm %s1281_s24, 4096 }
  0x77   : > { %p2330_p11 = por %p116_p5, %p3302_p3  ;;  %p3304_p12 = scmp.lt.s32.totalorder %s2020_s25, 4 }
  0x78   : > { %s221_s27 = scalar_lea.vmem [#allocation7], %s1379_s23  ;;  %s1865_s10 = scalar_lea.hbm %s1281_s24, 5120 }
  0x79   : > { %p2338_p10 = pnand %p3304_p12, %p112_p1  ;;  %s232_s28 = sshll.u32 %s221_s27, 4  ;;  %s2342_s28 = int_to_ptr.vmem [resolvable:$true] %s232_s28 }
  0x7a   : > { %p1836_p7 = scmp.ne.s32.totalorder %s2334_s1, %s1865_s10  ;;  %s1840_s15 = scalar_lea.hbm %s3208_s2, 12288 }
  0x7b   : > { %p1837_p13 = pneg %p2338_p10  ;;  %p1841_p4 = scmp.lt.u32.totalorder %s2334_s1, %s3208_s2 }
  0x7c   : > { %p1842_p2 = scmp.lt.u32.totalorder %s1840_s15, %s1865_s10  ;;  %p1844_p5 = scmp.lt.u32.totalorder %s1865_s10, %s2334_s1 }
  0x7d   : > { %p1838_p6 = pnand %p1837_p13, %p1836_p7 }
  0x7e   : > { %p1843_p9 = por %p1842_p2, %p1841_p4 }
  0x7f   : > { %p1839_p0 = pneg %p1838_p6 }
  0x80   : > { %p1845_p8 = por %p1844_p5, %p1843_p9 }
  0x82   : > { %p1846_p1 = pnand %p1845_p8, %p1839_p0 }
  0x84   : > { %1849 = shalt.err (!%p1846_p1)
}
  0x85   : > { %s1850_s23 = scalar_lea.vmem %s2342_s28, 1024  ;;  %s2026_s24 = smov [#allocation7]  }
  0x86   : > { %p1851_p3 = scmp.ne.s32.totalorder %s2342_s28, %s1850_s23  ;;  %s1855_s27 = sshll.u32 %s2026_s24, 4  ;;  %s1856_s27 = int_to_ptr.vmem [resolvable:$false] %s1855_s27 }
  0x87   : > { %s1857_s22 = scalar_lea.vmem %s1856_s27, 2048  ;;  %p1858_p6 = scmp.lt.s32.totalorder %s2342_s28, %s1856_s27 }
  0x88   : > { %p1853_p12 = pnand %p1851_p3, %p1837_p13  ;;  %p1859_p4 = scmp.lt.s32.totalorder %s1857_s22, %s1850_s23 }
  0x8a   : > { %p1854_p7 = pneg %p1853_p12  ;;  %p1860_p2 = por %p1859_p4, %p1858_p6 }
  0x8c   : > { %p1861_p9 = pnand %p1860_p2, %p1854_p7 }
  0x8e   : > { %1864 = shalt.err (!%p1861_p9)
}
  0x8f   : > { %1518 = dma.hbm_to_vmem [thread:$0]  (!%p2338_p10), %s2334_s1, 1024, %s2342_s28, %s2192_s21, %s3300_s3, %s3300_s3, %s3299_s4  }
  0x90   : > { %p3306_p13 = scmp.ne.s32.totalorder %s3289_s9, 0 }
  0x92   : > { %244 = sbr.rel (%p3306_p13) target bundleno = 1018 (0x3fa), region = 32 }
  0x99   : > { %s2375_s10 = sand.u32 1, %s1996_s19   ;;  %p3307_p0 = scmp.ne.s32.totalorder %s3293_s30, 0 }
  0x9a   : > { %s1383_s11 = sshll.u32 %s2375_s10, 6  ;;  %s247_s15 = scalar_lea.sflag [#allocation3], %s2375_s10 }
  0x9b   : > { %s2381_s12 = scalar_lea.vmem [#allocation2], %s1383_s11 }
  0x9c   : > { %1951 = dma.done.wait (%p3307_p0), %s247_s15, 1024  }
  0x9d   : > { %1953 = vsyncadd (%p3307_p0), %s247_s15, 4294966272  ;;  %s3308_s21 = sld [smem:[#allocation13_spill]]  ;;  %s255_s4 = sand.u32 1, %s2122_s26  }
  0x9e   : > { %s3309_s9 = sld [smem:[#allocation20_spill]]  ;;  %s256_s28 = scalar_lea.sflag [#allocation6], %s255_s4 }
  0xa3   : > { %s257_s3 = sand.u32 1, %s3308_s21  }
  0xa4   : > { %s1384_s1 = sshll.u32 %s257_s3, 6  ;;  %p3310_p10 = scmp.ne.s32.totalorder %s3309_s9, 0 }
  0xa5   : > { %s2389_s8 = scalar_lea.vmem [#allocation5], %s1384_s1 }
  0xa6   : > { %1955 = dma.done.wait (%p3310_p10), %s256_s28, 1024  }
  0xa7   : > { %1957 = vsyncadd (%p3310_p10), %s256_s28, 4294966272  ;;  %s266_s6 = sand.u32 1, %s1972_s13  }
  0xa8   : > { %s1385_s23 = sshll.u32 %s266_s6, 6 }
  0xa9   : > { %s2396_s30 = scalar_lea.vmem [#allocation7], %s1385_s23 }
  0xaa   : > { %1959 = dma.done.wait (%p2330_p11), %s256_s28, 1024  }
  0xab   : > { %1961 = vsyncadd (%p2330_p11), %s256_s28, 4294966272  ;;  %v2027_v0 = vmov 0.0   ;;  %v315_v1 = vld [vmem:[%s2389_s8] sm:$0xff]  ;;  %v317_v2 = vld [vmem:[%s2389_s8 + $0x10] sm:$0xff]  ;;  %vm403_vm0 = vcmask 261120   ;;  %s3413_s0 = sld [smem:[#allocation14_spill]] }
  0xac   : > { %564 = vmatprep.mubr.f32.mxu0 %v2027_v0  ;;  %v323_v3 = vmul.f32 0.17677669, %v315_v1  ;;  %v316_v4 = vld [vmem:[%s2389_s8 + $0x8] sm:$0xff]  ;;  %v318_v5 = vld [vmem:[%s2389_s8 + $0x18] sm:$0xff]  ;;  %v325_v6 = vmul.f32 0.17677669, %v317_v2 }
  0xad   : > { %v324_v7 = vmul.f32 0.17677669, %v316_v4  ;;  %v319_v8 = vld [vmem:[%s2389_s8 + $0x20] sm:$0xff]  ;;  %v308_v9 = vld [vmem:[%s2381_s12 + $0x8] sm:$0xff]  ;;  %v326_v10 = vmul.f32 0.17677669, %v318_v5 }
  0xae   : > { %339 = vxpose.xlu0.b32.start [1/4] (short) %v323_v3, 128  ;;  %v320_v11 = vld [vmem:[%s2389_s8 + $0x28] sm:$0xff]  ;;  %v310_v12 = vld [vmem:[%s2381_s12 + $0x18] sm:$0xff]  ;;  %v307_v13 = vld [vmem:[%s2381_s12] sm:$0xff]  ;;  %v327_v18 = vmul.f32 0.17677669, %v319_v8  ;;  %s3414_s26 = sld [smem:[#allocation15_spill]] }
  0xaf   : > { %371 = vxpose.xlu1.b32.start [1/4] (short) %v324_v7, 128  ;;  %v1428_v14 = vpack.c.bf16 %v310_v12, %v308_v9  ;;  %v309_v15 = vld [vmem:[%s2381_s12 + $0x10] sm:$0xff]  ;;  %v312_v16 = vld [vmem:[%s2381_s12 + $0x28] sm:$0xff]  ;;  %v314_v17 = vld [vmem:[%s2381_s12 + $0x38] sm:$0xff]  ;;  %v328_v24 = vmul.f32 0.17677669, %v320_v11  ;;  %s300_s24 = scalar_lea.vmem [#allocation8], %s1383_s11 }
  0xb0   : > { %v1430_v19 = vpack.c.bf16 %v309_v15, %v307_v13  ;;  %v1432_v20 = vpack.c.bf16 %v314_v17, %v312_v16  ;;  %v311_v21 = vld [vmem:[%s2381_s12 + $0x20] sm:$0xff]  ;;  %v313_v22 = vld [vmem:[%s2381_s12 + $0x30] sm:$0xff]  ;;  %v322_v26 = vld [vmem:[%s2389_s8 + $0x38] sm:$0xff]  ;;  %s1227_s12 = sshll.u32 %s300_s24, 4  ;;  %s3415_s4 = sld [smem:[#allocation45_spill]]  ;;  %s3123_s12 = int_to_ptr.vmem [resolvable:$true] %s1227_s12 }
  0xb1   : > { %v321_v23 = vld [vmem:[%s2389_s8 + $0x30] sm:$0xff]  ;;  %1429 = vmatprep.subr.bf16.mxu0 %v1428_v14  ;;  %v1434_v25 = vpack.c.bf16 %v313_v22, %v311_v21  ;;  %v330_v28 = vmul.f32 0.17677669, %v322_v26  ;;  %s1427_s27 = sshll.u32 %s3413_s0, 3  ;;  %s1211_s1 = scalar_lea.sflag [#allocation4], %s2375_s10 }
  0xb2   : > { %340 = vxpose.xlu0.b32.cont [2/4] (short) %v325_v6, 128  ;;  %1431 = vmatpush1.bf16.msra.mxu0 %v1430_v19  ;;  %v329_v27 = vmul.f32 0.17677669, %v321_v23  ;;  %s1866_s28 = scalar_lea.vmem %s3123_s12, 1024  ;;  %p3416_p5 = scmp.ne.s32.totalorder %s3294_s7, 0 }
  0xb3   : > { %372 = vxpose.xlu1.b32.cont [2/4] (short) %v326_v10, 128  ;;  %1433 = vmatprep.subr.bf16.mxu0 %v1432_v20  ;;  %p1867_p11 = scmp.ne.s32.totalorder %s3123_s12, %s1866_s28  ;;  %s2028_s8 = smov [#allocation8]  }
  0xb4   : > { %s1422_s22 = sshll.u32 %s3414_s26, 4  ;;  %s1870_s6 = sshll.u32 %s2028_s8, 4  ;;  %s1871_s6 = int_to_ptr.vmem [resolvable:$false] %s1870_s6 }
  0xb5   : > { %s1224_s15 = sadd.s32 %s1427_s27, %s1422_s22  ;;  %p1868_p8 = pnand %p1867_p11, %p3416_p5 }
  0xb6   : > { %341 = vxpose.xlu0.b32.cont [3/4] (short) %v327_v18, 128  ;;  %1435 = vmatpush1.bf16.msra.mxu0 %v1434_v25  ;;  %s1423_s11 = sshll.u32 %s1224_s15, 7  ;;  %s1872_s23 = scalar_lea.vmem %s1871_s6, 2048 }
  0xb7   : > { %373 = vxpose.xlu1.b32.cont [3/4] (short) %v328_v24, 128  ;;  %s3128_s3 = scalar_lea.hbm %s3415_s4, %s1423_s11  ;;  %p1869_p1 = pneg %p1868_p8 }
  0xb8   : > { %p1873_p3 = scmp.lt.s32.totalorder %s3123_s12, %s1871_s6  ;;  %p1874_p12 = scmp.lt.s32.totalorder %s1872_s23, %s1866_s28 }
  0xba   : > { %342 = vxpose.xlu0.b32.end [4/4] (short) %v329_v27, 128  ;;  %p1875_p7 = por %p1874_p12, %p1873_p3 }
  0xbb   : > { %374 = vxpose.xlu1.b32.end [4/4] (short) %v330_v28, 128 }
  0xbc   : > { %p1876_p6 = pnand %p1875_p7, %p1869_p1 }
 0x12e   : > { %v355_v29 = vpop.trf.xlu0 }
 0x12f   : > { %1387 = vmatmul.mubr.msk.f32.vlgmr.msra.gmra.mrb[0].mxu0 %vm403_vm0, %v355_v29  ;;  %v387_v38 = vpop.trf.xlu1 }
 0x130   : > { %570 = vmatprep.mubr.f32.mxu0 %v2027_v0 }
 0x132   : > { %v356_v30 = vpop.trf.xlu0 }
 0x133   : > { %1388 = vmatmul.mubr.msk.f32.gmra.mrb[2].mxu0 %vm403_vm0, %v356_v30  ;;  %v388_v40 = vpop.trf.xlu1 }
 0x134   : > { %576 = vmatprep.mubr.f32.mxu0 %v2027_v0 }
 0x136   : > { %v357_v31 = vpop.trf.xlu0 }
 0x137   : > { %1389 = vmatmul.mubr.msk.f32.gmra.mrb[4].mxu0 %vm403_vm0, %v357_v31  ;;  %v389_v43 = vpop.trf.xlu1 }
 0x138   : > { %582 = vmatprep.mubr.f32.mxu0 %v2027_v0 }
 0x13a   : > { %v358_v32 = vpop.trf.xlu0 }
 0x13b   : > { %1390 = vmatmul.mubr.msk.f32.gmra.mrb[6].mxu0 %vm403_vm0, %v358_v32  ;;  %v390_v45 = vpop.trf.xlu1 }
 0x13c   : > { %588 = vmatprep.mubr.f32.mxu0 %v2027_v0 }
 0x13e   : > { %v359_v33 = vpop.trf.xlu0 }
 0x13f   : > { %1391 = vmatmul.mubr.msk.f32.gmra.mrb[8].mxu0 %vm403_vm0, %v359_v33  ;;  %v391_v48 = vpop.trf.xlu1 }
 0x140   : > { %594 = vmatprep.mubr.f32.mxu0 %v2027_v0 }
 0x142   : > { %v360_v34 = vpop.trf.xlu0 }
 0x143   : > { %1392 = vmatmul.mubr.msk.f32.gmra.mrb[10].mxu0 %vm403_vm0, %v360_v34  ;;  %v392_v50 = vpop.trf.xlu1 }
 0x144   : > { %600 = vmatprep.mubr.f32.mxu0 %v2027_v0 }
 0x146   : > { %v361_v35 = vpop.trf.xlu0 }
 0x147   : > { %1393 = vmatmul.mubr.msk.f32.gmra.mrb[12].mxu0 %vm403_vm0, %v361_v35  ;;  %v393_v51 = vpop.trf.xlu1 }
 0x148   : > { %606 = vmatprep.mubr.f32.mxu0 %v2027_v0 }
 0x14a   : > { %v362_v36 = vpop.trf.xlu0 }
 0x14b   : > { %1394 = vmatmul.mubr.msk.f32.gmra.mrb[14].mxu0 %vm403_vm0, %v362_v36  ;;  %v394_v52 = vpop.trf.xlu1 }
 0x14c   : > { %612 = vmatprep.mubr.f32.mxu0 %v2027_v0 }
 0x14e   : > { %v363_v37 = vpop.trf.xlu0 }
 0x14f   : > { %1395 = vmatmul.mubr.msk.f32.gmra.mrb[16].mxu0 %vm403_vm0, %v363_v37  ;;  %v395_v53 = vpop.trf.xlu1 }
 0x150   : > { %618 = vmatprep.mubr.f32.mxu0 %v2027_v0 }
 0x152   : > { %v364_v39 = vpop.trf.xlu0 }
 0x153   : > { %1396 = vmatmul.mubr.msk.f32.gmra.mrb[18].mxu0 %vm403_vm0, %v364_v39  ;;  %v396_v54 = vpop.trf.xlu1 }
 0x154   : > { %624 = vmatprep.mubr.f32.mxu0 %v2027_v0 }
 0x156   : > { %v365_v41 = vpop.trf.xlu0 }
 0x157   : > { %1397 = vmatmul.mubr.msk.f32.gmra.mrb[20].mxu0 %vm403_vm0, %v365_v41  ;;  %v397_v55 = vpop.trf.xlu1 }
 0x158   : > { %630 = vmatprep.mubr.f32.mxu0 %v2027_v0 }
 0x15a   : > { %v366_v42 = vpop.trf.xlu0 }
 0x15b   : > { %1398 = vmatmul.mubr.msk.f32.gmra.mrb[22].mxu0 %vm403_vm0, %v366_v42  ;;  %v398_v56 = vpop.trf.xlu1 }
 0x15c   : > { %636 = vmatprep.mubr.f32.mxu0 %v2027_v0 }
 0x15e   : > { %v367_v44 = vpop.trf.xlu0 }
 0x15f   : > { %1399 = vmatmul.mubr.msk.f32.gmra.mrb[24].mxu0 %vm403_vm0, %v367_v44  ;;  %v399_v57 = vpop.trf.xlu1 }
 0x160   : > { %642 = vmatprep.mubr.f32.mxu0 %v2027_v0 }
 0x162   : > { %v368_v46 = vpop.trf.xlu0 }
 0x163   : > { %1400 = vmatmul.mubr.msk.f32.gmra.mrb[26].mxu0 %vm403_vm0, %v368_v46  ;;  %v400_v58 = vpop.trf.xlu1 }
 0x164   : > { %648 = vmatprep.mubr.f32.mxu0 %v2027_v0 }
 0x166   : > { %v369_v47 = vpop.trf.xlu0 }
 0x167   : > { %1401 = vmatmul.mubr.msk.f32.gmra.mrb[28].mxu0 %vm403_vm0, %v369_v47  ;;  %v401_v59 = vpop.trf.xlu1 }
 0x168   : > { %654 = vmatprep.mubr.f32.mxu0 %v2027_v0 }
 0x16a   : > { %v370_v49 = vpop.trf.xlu0 }
 0x16b   : > { %1402 = vmatmul.mubr.msk.f32.gmra.mrb[30].mxu0 %vm403_vm0, %v370_v49  ;;  %v402_v60 = vpop.trf.xlu1 }
 0x16c   : > { %660 = vmatprep.mubr.f32.mxu0 %v2027_v0 }
 0x16f   : > { %1403 = vmatmul.mubr.msk.f32.gmra.mrb[32].mxu0 %vm403_vm0, %v387_v38 }
 0x170   : > { %666 = vmatprep.mubr.f32.mxu0 %v2027_v0 }
 0x173   : > { %1404 = vmatmul.mubr.msk.f32.gmra.mrb[34].mxu0 %vm403_vm0, %v388_v40 }
 0x174   : > { %672 = vmatprep.mubr.f32.mxu0 %v2027_v0 }
 0x177   : > { %1405 = vmatmul.mubr.msk.f32.gmra.mrb[36].mxu0 %vm403_vm0, %v389_v43 }
 0x178   : > { %678 = vmatprep.mubr.f32.mxu0 %v2027_v0 }
 0x17b   : > { %1406 = vmatmul.mubr.msk.f32.gmra.mrb[38].mxu0 %vm403_vm0, %v390_v45 }
 0x17c   : > { %684 = vmatprep.mubr.f32.mxu0 %v2027_v0 }
 0x17f   : > { %1407 = vmatmul.mubr.msk.f32.gmra.mrb[40].mxu0 %vm403_vm0, %v391_v48 }
 0x180   : > { %690 = vmatprep.mubr.f32.mxu0 %v2027_v0 }
 0x183   : > { %1408 = vmatmul.mubr.msk.f32.gmra.mrb[42].mxu0 %vm403_vm0, %v392_v50 }
 0x184   : > { %696 = vmatprep.mubr.f32.mxu0 %v2027_v0 }
 0x187   : > { %1409 = vmatmul.mubr.msk.f32.gmra.mrb[44].mxu0 %vm403_vm0, %v393_v51 }
 0x188   : > { %702 = vmatprep.mubr.f32.mxu0 %v2027_v0 }
 0x18b   : > { %1410 = vmatmul.mubr.msk.f32.gmra.mrb[46].mxu0 %vm403_vm0, %v394_v52 }
 0x18c   : > { %708 = vmatprep.mubr.f32.mxu0 %v2027_v0 }
 0x18f   : > { %1411 = vmatmul.mubr.msk.f32.gmra.mrb[48].mxu0 %vm403_vm0, %v395_v53 }
 0x190   : > { %714 = vmatprep.mubr.f32.mxu0 %v2027_v0 }
 0x193   : > { %1412 = vmatmul.mubr.msk.f32.gmra.mrb[50].mxu0 %vm403_vm0, %v396_v54 }
 0x194   : > { %720 = vmatprep.mubr.f32.mxu0 %v2027_v0 }
 0x197   : > { %1413 = vmatmul.mubr.msk.f32.gmra.mrb[52].mxu0 %vm403_vm0, %v397_v55 }
 0x198   : > { %726 = vmatprep.mubr.f32.mxu0 %v2027_v0 }
 0x19b   : > { %1414 = vmatmul.mubr.msk.f32.gmra.mrb[54].mxu0 %vm403_vm0, %v398_v56 }
 0x19c   : > { %732 = vmatprep.mubr.f32.mxu0 %v2027_v0 }
 0x19f   : > { %1415 = vmatmul.mubr.msk.f32.gmra.mrb[56].mxu0 %vm403_vm0, %v399_v57 }
 0x1a0   : > { %738 = vmatprep.mubr.f32.mxu0 %v2027_v0 }
 0x1a3   : > { %1416 = vmatmul.mubr.msk.f32.gmra.mrb[58].mxu0 %vm403_vm0, %v400_v58 }
 0x1a4   : > { %744 = vmatprep.mubr.f32.mxu0 %v2027_v0 }
 0x1a7   : > { %1417 = vmatmul.mubr.msk.f32.gmra.mrb[60].mxu0 %vm403_vm0, %v401_v59 }
 0x1a8   : > { %750 = vmatprep.mubr.f32.mxu0 %v2027_v0 }
 0x1ab   : > { %1418 = vmatmul.mubr.msk.f32.gmra.mrb[62].mxu0 %vm403_vm0, %v402_v60 }
 0x202   : > { %v2482_v61 = vpop.f32.mrb[0].mxu0 }
 0x203   : > { %v2484_v62 = vpop.f32.mrb[1].mxu0 }
 0x206   : > { %v2486_v63 = vpop.f32.mrb[2].mxu0 }
 0x207   : > { %v2488_v1 = vpop.f32.mrb[3].mxu0 }
 0x20a   : > { %v2490_v2 = vpop.f32.mrb[4].mxu0 }
 0x20b   : > { %v757_v3 = vmax.f32 %v2482_v61, %v2490_v2  ;;  %v2494_v4 = vpop.f32.mrb[5].mxu0 }
 0x20c   : > { %v794_v0 = vmax.f32 %v2484_v62, %v2494_v4 }
 0x20e   : > { %v2498_v5 = vpop.f32.mrb[6].mxu0 }
 0x20f   : > { %v758_v6 = vmax.f32 %v2486_v63, %v2498_v5  ;;  %v2502_v7 = vpop.f32.mrb[7].mxu0 }
 0x210   : > { %v795_v8 = vmax.f32 %v2488_v1, %v2502_v7 }
 0x212   : > { %v2506_v9 = vpop.f32.mrb[8].mxu0 }
 0x213   : > { %v759_v10 = vmax.f32 %v757_v3, %v2506_v9  ;;  %v2509_v11 = vpop.f32.mrb[9].mxu0 }
 0x214   : > { %v796_v12 = vmax.f32 %v794_v0, %v2509_v11 }
 0x216   : > { %v2512_v13 = vpop.f32.mrb[10].mxu0 }
 0x217   : > { %v760_v14 = vmax.f32 %v758_v6, %v2512_v13  ;;  %v2515_v15 = vpop.f32.mrb[11].mxu0 }
 0x218   : > { %v797_v16 = vmax.f32 %v795_v8, %v2515_v15 }
 0x21a   : > { %v2518_v17 = vpop.f32.mrb[12].mxu0 }
 0x21b   : > { %v761_v18 = vmax.f32 %v759_v10, %v2518_v17  ;;  %v2521_v19 = vpop.f32.mrb[13].mxu0 }
 0x21c   : > { %v798_v20 = vmax.f32 %v796_v12, %v2521_v19 }
 0x21e   : > { %v2524_v21 = vpop.f32.mrb[14].mxu0 }
 0x21f   : > { %v762_v22 = vmax.f32 %v760_v14, %v2524_v21  ;;  %v2527_v23 = vpop.f32.mrb[15].mxu0 }
 0x220   : > { %v799_v24 = vmax.f32 %v797_v16, %v2527_v23 }
 0x222   : > { %v2530_v25 = vpop.f32.mrb[16].mxu0 }
 0x223   : > { %v763_v26 = vmax.f32 %v761_v18, %v2530_v25  ;;  %v2533_v27 = vpop.f32.mrb[17].mxu0 }
 0x224   : > { %v800_v28 = vmax.f32 %v798_v20, %v2533_v27 }
 0x226   : > { %v2536_v29 = vpop.f32.mrb[18].mxu0 }
 0x227   : > { %v764_v30 = vmax.f32 %v762_v22, %v2536_v29  ;;  %v2539_v31 = vpop.f32.mrb[19].mxu0 }
 0x228   : > { %v801_v32 = vmax.f32 %v799_v24, %v2539_v31 }
 0x22a   : > { %v2542_v33 = vpop.f32.mrb[20].mxu0 }
 0x22b   : > { %v765_v34 = vmax.f32 %v763_v26, %v2542_v33  ;;  %v2545_v35 = vpop.f32.mrb[21].mxu0 }
 0x22c   : > { %v802_v36 = vmax.f32 %v800_v28, %v2545_v35 }
 0x22e   : > { %v2548_v37 = vpop.f32.mrb[22].mxu0 }
 0x22f   : > { %v766_v38 = vmax.f32 %v764_v30, %v2548_v37  ;;  %v2551_v39 = vpop.f32.mrb[23].mxu0 }
 0x230   : > { %3311 = vst [vmem:[#allocation22_spill] sm:$0xff] %v2551_v39  ;;  %v803_v40 = vmax.f32 %v801_v32, %v2551_v39 }
 0x232   : > { %v2554_v41 = vpop.f32.mrb[24].mxu0 }
 0x233   : > { %v767_v42 = vmax.f32 %v765_v34, %v2554_v41  ;;  %v2557_v43 = vpop.f32.mrb[25].mxu0 }
 0x234   : > { %3312 = vst [vmem:[#allocation23_spill] sm:$0xff] %v2557_v43  ;;  %v804_v44 = vmax.f32 %v802_v36, %v2557_v43 }
 0x236   : > { %v2560_v45 = vpop.f32.mrb[26].mxu0 }
 0x237   : > { %v768_v46 = vmax.f32 %v766_v38, %v2560_v45  ;;  %v2563_v47 = vpop.f32.mrb[27].mxu0 }
 0x238   : > { %3313 = vst [vmem:[#allocation24_spill] sm:$0xff] %v2563_v47  ;;  %v805_v48 = vmax.f32 %v803_v40, %v2563_v47 }
 0x23a   : > { %v2566_v49 = vpop.f32.mrb[28].mxu0 }
 0x23b   : > { %v769_v50 = vmax.f32 %v767_v42, %v2566_v49  ;;  %v2569_v51 = vpop.f32.mrb[29].mxu0 }
 0x23c   : > { %3314 = vst [vmem:[#allocation25_spill] sm:$0xff] %v2569_v51  ;;  %v806_v52 = vmax.f32 %v804_v44, %v2569_v51 }
 0x23e   : > { %v2572_v53 = vpop.f32.mrb[30].mxu0 }
 0x23f   : > { %v770_v54 = vmax.f32 %v768_v46, %v2572_v53  ;;  %v2575_v55 = vpop.f32.mrb[31].mxu0 }
 0x240   : > { %3315 = vst [vmem:[#allocation26_spill] sm:$0xff] %v2575_v55  ;;  %v807_v56 = vmax.f32 %v805_v48, %v2575_v55 }
 0x242   : > { %v2578_v57 = vpop.f32.mrb[32].mxu0 }
 0x243   : > { %v771_v58 = vmax.f32 %v769_v50, %v2578_v57  ;;  %v2581_v59 = vpop.f32.mrb[33].mxu0 }
 0x244   : > { %3316 = vst [vmem:[#allocation27_spill] sm:$0xff] %v2581_v59  ;;  %v808_v60 = vmax.f32 %v806_v52, %v2581_v59 }
 0x246   : > { %v2584_v3 = vpop.f32.mrb[34].mxu0 }
 0x247   : > { %v772_v0 = vmax.f32 %v770_v54, %v2584_v3  ;;  %v2587_v6 = vpop.f32.mrb[35].mxu0 }
 0x248   : > { %3317 = vst [vmem:[#allocation28_spill] sm:$0xff] %v2587_v6  ;;  %v809_v8 = vmax.f32 %v807_v56, %v2587_v6 }
 0x24a   : > { %v2590_v10 = vpop.f32.mrb[36].mxu0 }
 0x24b   : > { %v773_v12 = vmax.f32 %v771_v58, %v2590_v10  ;;  %v2593_v14 = vpop.f32.mrb[37].mxu0 }
 0x24c   : > { %3318 = vst [vmem:[#allocation29_spill] sm:$0xff] %v2593_v14  ;;  %v810_v16 = vmax.f32 %v808_v60, %v2593_v14 }
 0x24e   : > { %v2596_v18 = vpop.f32.mrb[38].mxu0 }
 0x24f   : > { %v774_v20 = vmax.f32 %v772_v0, %v2596_v18  ;;  %v2599_v22 = vpop.f32.mrb[39].mxu0 }
 0x250   : > { %3319 = vst [vmem:[#allocation30_spill] sm:$0xff] %v2599_v22  ;;  %v811_v24 = vmax.f32 %v809_v8, %v2599_v22 }
 0x252   : > { %v2602_v26 = vpop.f32.mrb[40].mxu0 }
 0x253   : > { %v775_v28 = vmax.f32 %v773_v12, %v2602_v26  ;;  %v2605_v30 = vpop.f32.mrb[41].mxu0 }
 0x254   : > { %3320 = vst [vmem:[#allocation31_spill] sm:$0xff] %v2605_v30  ;;  %v812_v32 = vmax.f32 %v810_v16, %v2605_v30 }
 0x256   : > { %v2608_v34 = vpop.f32.mrb[42].mxu0 }
 0x257   : > { %v776_v36 = vmax.f32 %v774_v20, %v2608_v34  ;;  %v2611_v38 = vpop.f32.mrb[43].mxu0 }
 0x258   : > { %3321 = vst [vmem:[#allocation32_spill] sm:$0xff] %v2611_v38  ;;  %v813_v40 = vmax.f32 %v811_v24, %v2611_v38 }
 0x25a   : > { %v2614_v42 = vpop.f32.mrb[44].mxu0 }
 0x25b   : > { %v777_v44 = vmax.f32 %v775_v28, %v2614_v42  ;;  %v2617_v46 = vpop.f32.mrb[45].mxu0 }
 0x25c   : > { %3322 = vst [vmem:[#allocation33_spill] sm:$0xff] %v2617_v46  ;;  %v814_v48 = vmax.f32 %v812_v32, %v2617_v46 }
 0x25e   : > { %v2620_v50 = vpop.f32.mrb[46].mxu0 }
 0x25f   : > { %v778_v52 = vmax.f32 %v776_v36, %v2620_v50  ;;  %v2623_v54 = vpop.f32.mrb[47].mxu0 }
 0x260   : > { %3323 = vst [vmem:[#allocation34_spill] sm:$0xff] %v2623_v54  ;;  %v815_v56 = vmax.f32 %v813_v40, %v2623_v54 }
 0x262   : > { %v2626_v58 = vpop.f32.mrb[48].mxu0 }
 0x263   : > { %v779_v60 = vmax.f32 %v777_v44, %v2626_v58  ;;  %v2629_v0 = vpop.f32.mrb[49].mxu0 }
 0x264   : > { %3324 = vst [vmem:[#allocation35_spill] sm:$0xff] %v2629_v0  ;;  %v816_v8 = vmax.f32 %v814_v48, %v2629_v0 }
 0x266   : > { %v2632_v12 = vpop.f32.mrb[50].mxu0 }
 0x267   : > { %v780_v16 = vmax.f32 %v778_v52, %v2632_v12  ;;  %v2635_v20 = vpop.f32.mrb[51].mxu0 }
 0x268   : > { %3325 = vst [vmem:[#allocation36_spill] sm:$0xff] %v2635_v20  ;;  %v817_v24 = vmax.f32 %v815_v56, %v2635_v20 }
 0x26a   : > { %v2638_v28 = vpop.f32.mrb[52].mxu0 }
 0x26b   : > { %v781_v32 = vmax.f32 %v779_v60, %v2638_v28  ;;  %v2641_v36 = vpop.f32.mrb[53].mxu0 }
 0x26c   : > { %3326 = vst [vmem:[#allocation37_spill] sm:$0xff] %v2641_v36  ;;  %v818_v40 = vmax.f32 %v816_v8, %v2641_v36 }
 0x26e   : > { %v2644_v44 = vpop.f32.mrb[54].mxu0 }
 0x26f   : > { %v782_v48 = vmax.f32 %v780_v16, %v2644_v44  ;;  %v2647_v0 = vpop.f32.mrb[55].mxu0 }
 0x270   : > { %3327 = vst [vmem:[#allocation38_spill] sm:$0xff] %v2647_v0  ;;  %v819_v52 = vmax.f32 %v817_v24, %v2647_v0 }
 0x272   : > { %v2650_v54 = vpop.f32.mrb[56].mxu0 }
 0x273   : > { %v783_v56 = vmax.f32 %v781_v32, %v2650_v54  ;;  %v2653_v20 = vpop.f32.mrb[57].mxu0 }
 0x274   : > { %3328 = vst [vmem:[#allocation39_spill] sm:$0xff] %v2653_v20  ;;  %v820_v60 = vmax.f32 %v818_v40, %v2653_v20 }
 0x276   : > { %v2656_v46 = vpop.f32.mrb[58].mxu0 }
 0x277   : > { %v784_v8 = vmax.f32 %v782_v48, %v2656_v46  ;;  %v2659_v36 = vpop.f32.mrb[59].mxu0 }
 0x278   : > { %3329 = vst [vmem:[#allocation40_spill] sm:$0xff] %v2659_v36  ;;  %v821_v16 = vmax.f32 %v819_v52, %v2659_v36 }
 0x27a   : > { %v2662_v38 = vpop.f32.mrb[60].mxu0 }
 0x27b   : > { %v785_v24 = vmax.f32 %v783_v56, %v2662_v38  ;;  %v2665_v0 = vpop.f32.mrb[61].mxu0  ;;  %v332_v56 = vld [vmem:[%s2396_s30 + $0x8] sm:$0xff] }
 0x27c   : > { %3330 = vst [vmem:[#allocation41_spill] sm:$0xff] %v2665_v0  ;;  %v822_v32 = vmax.f32 %v820_v60, %v2665_v0  ;;  %1161 = vmatprep.mubr.f32.mxu1 %v332_v56 }
 0x27e   : > { %v2668_v30 = vpop.f32.mrb[62].mxu0 }
 0x27f   : > { %v786_v40 = vmax.f32 %v784_v8, %v2668_v30  ;;  %v2671_v20 = vpop.f32.mrb[63].mxu0 }
 0x280   : > { %3331 = vst [vmem:[#allocation42_spill] sm:$0xff] %v2671_v20  ;;  %v823_v48 = vmax.f32 %v821_v16, %v2671_v20 }
 0x281   : > { %v787_v22 = vmax.f32 %v785_v24, %v786_v40 }
 0x282   : > { %v824_v14 = vmax.f32 %v822_v32, %v823_v48 }
 0x283   : > { %v788_v52 = vrot.slane %v787_v22, 4 }
 0x284   : > { %v825_v36 = vrot.slane %v824_v14, 4 }
 0x285   : > { %v789_v6 = vmax.f32 %v787_v22, %v788_v52 }
 0x286   : > { %v826_v59 = vmax.f32 %v824_v14, %v825_v36 }
 0x287   : > { %v790_v55 = vrot.slane %v789_v6, 2 }
 0x288   : > { %v827_v51 = vrot.slane %v826_v59, 2 }
 0x289   : > { %v791_v47 = vmax.f32 %v789_v6, %v790_v55 }
 0x28a   : > { %v828_v60 = vmax.f32 %v826_v59, %v827_v51 }
 0x28b   : > { %v792_v0 = vrot.slane %v791_v47, 1 }
 0x28c   : > { %v829_v43 = vrot.slane %v828_v60, 1 }
 0x28d   : > { %v2675_v39 = vmax.f32 %v791_v47, %v792_v0 }
 0x28e   : > { %v2677_v8 = vmax.f32 %v828_v60, %v829_v43 }
 0x28f   : > { %v831_v16 = vsub.f32 %v2482_v61, %v2675_v39  ;;  %v833_v24 = vsub.f32 %v2486_v63, %v2675_v39  ;;  %v835_v14 = vsub.f32 %v2490_v2, %v2675_v39  ;;  %v837_v22 = vsub.f32 %v2498_v5, %v2675_v39 }
 0x290   : > { %v839_v51 = vsub.f32 %v2506_v9, %v2675_v39  ;;  %v841_v47 = vsub.f32 %v2512_v13, %v2675_v39  ;;  %v843_v43 = vsub.f32 %v2518_v17, %v2675_v39  ;;  %v845_v61 = vsub.f32 %v2524_v21, %v2675_v39 }
 0x291   : > { %v847_v63 = vsub.f32 %v2530_v25, %v2675_v39  ;;  %v849_v2 = vsub.f32 %v2536_v29, %v2675_v39  ;;  %v851_v5 = vsub.f32 %v2542_v33, %v2675_v39  ;;  %v853_v9 = vsub.f32 %v2548_v37, %v2675_v39 }
 0x292   : > { %v855_v13 = vsub.f32 %v2554_v41, %v2675_v39  ;;  %v857_v17 = vsub.f32 %v2560_v45, %v2675_v39  ;;  %v859_v21 = vsub.f32 %v2566_v49, %v2675_v39  ;;  %v861_v25 = vsub.f32 %v2572_v53, %v2675_v39 }
 0x293   : > { %v863_v29 = vsub.f32 %v2578_v57, %v2675_v39  ;;  %v865_v33 = vsub.f32 %v2584_v3, %v2675_v39  ;;  %v867_v37 = vsub.f32 %v2590_v10, %v2675_v39  ;;  %v869_v41 = vsub.f32 %v2596_v18, %v2675_v39  ;;  %v3351_v57 = vld [vmem:[#allocation41_spill] sm:$0xff] }
 0x294   : > { %v871_v45 = vsub.f32 %v2602_v26, %v2675_v39  ;;  %v873_v49 = vsub.f32 %v2608_v34, %v2675_v39  ;;  %v875_v53 = vsub.f32 %v2614_v42, %v2675_v39  ;;  %v877_v55 = vsub.f32 %v2620_v50, %v2675_v39 }
 0x295   : > { %v895_v42 = vmul.f32 1.442695, %v831_v16  ;;  %v899_v50 = vmul.f32 1.442695, %v833_v24  ;;  %v903_v0 = vmul.f32 1.442695, %v835_v14 }
 0x296   : > { %v907_v32 = vmul.f32 1.442695, %v837_v22  ;;  %v911_v48 = vmul.f32 1.442695, %v839_v51  ;;  %v915_v52 = vmul.f32 1.442695, %v841_v47 }
 0x297   : > { %1642 = vpow2.f32 %v895_v42  ;;  %v919_v56 = vmul.f32 1.442695, %v843_v43  ;;  %v923_v60 = vmul.f32 1.442695, %v845_v61  ;;  %v927_v26 = vmul.f32 1.442695, %v847_v63 }
 0x298   : > { %1644 = vpow2.f32 %v899_v50  ;;  %v931_v34 = vmul.f32 1.442695, %v849_v2  ;;  %v935_v16 = vmul.f32 1.442695, %v851_v5  ;;  %v939_v24 = vmul.f32 1.442695, %v853_v9 }
 0x299   : > { %1646 = vpow2.f32 %v903_v0  ;;  %v943_v14 = vmul.f32 1.442695, %v855_v13  ;;  %v947_v36 = vmul.f32 1.442695, %v857_v17  ;;  %v951_v22 = vmul.f32 1.442695, %v859_v21 }
 0x29a   : > { %1648 = vpow2.f32 %v907_v32  ;;  %v955_v18 = vmul.f32 1.442695, %v861_v25  ;;  %v959_v40 = vmul.f32 1.442695, %v863_v29  ;;  %v963_v42 = vmul.f32 1.442695, %v865_v33 }
 0x29b   : > { %1650 = vpow2.f32 %v911_v48  ;;  %v967_v51 = vmul.f32 1.442695, %v867_v37  ;;  %v971_v47 = vmul.f32 1.442695, %v869_v41  ;;  %v975_v50 = vmul.f32 1.442695, %v871_v45 }
 0x29c   : > { %1652 = vpow2.f32 %v915_v52  ;;  %v2747_v43 = vmul.f32 1.442695, %v873_v49  ;;  %v2749_v61 = vmul.f32 1.442695, %v875_v53  ;;  %v2751_v63 = vmul.f32 1.442695, %v877_v55 }
 0x29d   : > { %1654 = vpow2.f32 %v919_v56  ;;  %v3332_v45 = vld [vmem:[#allocation22_spill] sm:$0xff]  ;;  %v3334_v0 = vld [vmem:[#allocation24_spill] sm:$0xff]  ;;  %v3335_v52 = vld [vmem:[#allocation25_spill] sm:$0xff] }
 0x29e   : > { %1656 = vpow2.f32 %v923_v60  ;;  %v3336_v60 = vld [vmem:[#allocation26_spill] sm:$0xff]  ;;  %v3338_v41 = vld [vmem:[#allocation28_spill] sm:$0xff]  ;;  %v3339_v37 = vld [vmem:[#allocation29_spill] sm:$0xff] }
 0x29f   : > { %1658 = vpow2.f32 %v927_v26  ;;  %v3333_v26 = vld [vmem:[#allocation23_spill] sm:$0xff]  ;;  %v3340_v56 = vld [vmem:[#allocation30_spill] sm:$0xff]  ;;  %v3342_v21 = vld [vmem:[#allocation32_spill] sm:$0xff] }
 0x2a0   : > { %1660 = vpow2.f32 %v931_v34  ;;  %v3341_v25 = vld [vmem:[#allocation31_spill] sm:$0xff]  ;;  %v3343_v32 = vld [vmem:[#allocation33_spill] sm:$0xff]  ;;  %v3344_v9 = vld [vmem:[#allocation34_spill] sm:$0xff] }
 0x2a1   : > { %v2761_v17 = vpop.eup %1642  ;;  %1662 = vpow2.f32 %v935_v16  ;;  %v3345_v16 = vld [vmem:[#allocation35_spill] sm:$0xff]  ;;  %v3346_v2 = vld [vmem:[#allocation36_spill] sm:$0xff] }
 0x2a2   : > { %v2769_v33 = vpop.eup %1644  ;;  %1664 = vpow2.f32 %v939_v24  ;;  %v3337_v24 = vld [vmem:[#allocation27_spill] sm:$0xff] }
 0x2a3   : > { %v2777_v53 = vpop.eup %1646  ;;  %1666 = vpow2.f32 %v943_v14  ;;  %v1023_v55 = vadd.f32 %v2769_v33, %v2761_v17  ;;  %v3350_v14 = vld [vmem:[#allocation40_spill] sm:$0xff] }
 0x2a4   : > { %v2785_v48 = vpop.eup %1648  ;;  %1668 = vpow2.f32 %v947_v36  ;;  %v3348_v36 = vld [vmem:[#allocation38_spill] sm:$0xff] }
 0x2a5   : > { %v2793_v49 = vpop.eup %1650  ;;  %1670 = vpow2.f32 %v951_v22  ;;  %v1024_v34 = vadd.f32 %v2777_v53, %v1023_v55 }
 0x2a6   : > { %v2800_v29 = vpop.eup %1652  ;;  %1672 = vpow2.f32 %v955_v18 }
 0x2a7   : > { %v2808_v13 = vpop.eup %1654  ;;  %1674 = vpow2.f32 %v959_v40  ;;  %v1025_v55 = vadd.f32 %v2785_v48, %v1024_v34 }
 0x2a8   : > { %v2815_v5 = vpop.eup %1656  ;;  %1676 = vpow2.f32 %v963_v42 }
 0x2a9   : > { %v2823_v6 = vpop.eup %1658  ;;  %1678 = vpow2.f32 %v967_v51  ;;  %v1026_v34 = vadd.f32 %v2793_v49, %v1025_v55  ;;  %v3352_v55 = vsub.f32 %v2626_v58, %v2675_v39 }
 0x2aa   : > { %v2830_v59 = vpop.eup %1660  ;;  %1680 = vpow2.f32 %v971_v47  ;;  %v3353_v47 = vsub.f32 %v2632_v12, %v2675_v39 }
 0x2ab   : > { %v2838_v10 = vpop.eup %1662  ;;  %1682 = vpow2.f32 %v975_v50  ;;  %v991_v18 = vmul.f32 1.442695, %v3352_v55  ;;  %v1027_v42 = vadd.f32 %v2800_v29, %v1026_v34  ;;  %v3354_v50 = vsub.f32 %v2638_v28, %v2675_v39 }
 0x2ac   : > { %v2844_v3 = vpop.eup %1664  ;;  %1684 = vpow2.f32 %v2747_v43  ;;  %v995_v40 = vmul.f32 1.442695, %v3353_v47  ;;  %v3355_v43 = vsub.f32 %v2644_v44, %v2675_v39  ;;  %v3359_v44 = vsub.f32 %v2662_v38, %v2675_v39 }
 0x2ad   : > { %v2850_v22 = vpop.eup %1666  ;;  %1686 = vpow2.f32 %v2749_v61  ;;  %v999_v51 = vmul.f32 1.442695, %v3354_v50  ;;  %v1028_v58 = vadd.f32 %v2808_v13, %v1027_v42  ;;  %v3356_v61 = vsub.f32 %v2650_v54, %v2675_v39 }
 0x2ae   : > { %v2857_v55 = vpop.eup %1668  ;;  %1688 = vpow2.f32 %v2751_v63  ;;  %v1003_v34 = vmul.f32 1.442695, %v3355_v43  ;;  %v3357_v42 = vsub.f32 %v2656_v46, %v2675_v39 }
 0x2af   : > { %v2863_v12 = vpop.eup %1670  ;;  %1690 = vpow2.f32 %v991_v18  ;;  %v1007_v47 = vmul.f32 1.442695, %v3356_v61  ;;  %v1029_v28 = vadd.f32 %v2815_v5, %v1028_v58  ;;  %v1015_v18 = vmul.f32 1.442695, %v3359_v44 }
 0x2b0   : > { %v2869_v50 = vpop.eup %1672  ;;  %1692 = vpow2.f32 %v995_v40  ;;  %v1011_v63 = vmul.f32 1.442695, %v3357_v42  ;;  %v3360_v58 = vsub.f32 %v2668_v30, %v2675_v39  ;;  %v3363_v39 = vsub.f32 %v2494_v4, %v2677_v8 }
 0x2b1   : > { %v2874_v20 = vpop.eup %1674  ;;  %1694 = vpow2.f32 %v999_v51  ;;  %v1030_v43 = vadd.f32 %v2823_v6, %v1029_v28  ;;  %v3361_v51 = vsub.f32 %v2484_v62, %v2677_v8  ;;  %v3362_v28 = vsub.f32 %v2488_v1, %v2677_v8 }
 0x2b2   : > { %3358 = vst [vmem:[#allocation22_spill] sm:$0xff] %v2874_v20  ;;  %v2880_v54 = vpop.eup %1676  ;;  %1696 = vpow2.f32 %v1003_v34  ;;  %v1019_v40 = vmul.f32 1.442695, %v3360_v58  ;;  %v905_v30 = vmul.f32 1.442695, %v3363_v39  ;;  %v3364_v62 = vsub.f32 %v2502_v7, %v2677_v8 }
 0x2b3   : > { %v2885_v61 = vpop.eup %1678  ;;  %1698 = vpow2.f32 %v1007_v47  ;;  %v1031_v46 = vadd.f32 %v2830_v59, %v1030_v43  ;;  %v897_v42 = vmul.f32 1.442695, %v3361_v51  ;;  %v901_v34 = vmul.f32 1.442695, %v3362_v28 }
 0x2b4   : > { %v2891_v38 = vpop.eup %1680  ;;  %1700 = vpow2.f32 %v1011_v63  ;;  %v909_v43 = vmul.f32 1.442695, %v3364_v62  ;;  %v3365_v63 = vsub.f32 %v2509_v11, %v2677_v8  ;;  %v3366_v1 = vsub.f32 %v2515_v15, %v2677_v8 }
 0x2b5   : > { %v2899_v44 = vpop.eup %1682  ;;  %1702 = vpow2.f32 %v1015_v18  ;;  %v1032_v47 = vadd.f32 %v2838_v10, %v1031_v46  ;;  %v3367_v18 = vsub.f32 %v2521_v19, %v2677_v8  ;;  %v3368_v46 = vsub.f32 %v2527_v23, %v2677_v8 }
 0x2b6   : > { %v913_v58 = vmul.f32 1.442695, %v3365_v63  ;;  %v2908_v51 = vpop.eup %1684  ;;  %1704 = vpow2.f32 %v1019_v40  ;;  %v917_v4 = vmul.f32 1.442695, %v3366_v1  ;;  %v3369_v40 = vsub.f32 %v2533_v27, %v2677_v8 }
 0x2b7   : > { %v921_v28 = vmul.f32 1.442695, %v3367_v18  ;;  %v925_v7 = vmul.f32 1.442695, %v3368_v46  ;;  %v2919_v39 = vpop.eup %1686  ;;  %v1033_v11 = vadd.f32 %v2844_v3, %v1032_v47  ;;  %1706 = vpow2.f32 %v897_v42 }
 0x2b8   : > { %v929_v62 = vmul.f32 1.442695, %v3369_v40  ;;  %v3370_v15 = vsub.f32 %v2539_v31, %v2677_v8  ;;  %v2928_v1 = vpop.eup %1688  ;;  %1708 = vpow2.f32 %v901_v34 }
 0x2b9   : > { %v2936_v47 = vpop.eup %1690  ;;  %v1034_v27 = vadd.f32 %v2850_v22, %v1033_v11  ;;  %1710 = vpow2.f32 %v905_v30 }
 0x2ba   : > { %v933_v63 = vmul.f32 1.442695, %v3370_v15  ;;  %v2943_v18 = vpop.eup %1692  ;;  %1712 = vpow2.f32 %v909_v43  ;;  %v3371_v43 = vsub.f32 %v2545_v35, %v2677_v8  ;;  %v3372_v15 = vsub.f32 %v3332_v45, %v2677_v8 }
 0x2bb   : > { %v2951_v11 = vpop.eup %1694  ;;  %v1035_v30 = vadd.f32 %v2857_v55, %v1034_v27  ;;  %1714 = vpow2.f32 %v913_v58 }
 0x2bc   : > { %v2958_v31 = vpop.eup %1696  ;;  %1716 = vpow2.f32 %v917_v4  ;;  %v937_v34 = vmul.f32 1.442695, %v3371_v43  ;;  %v941_v40 = vmul.f32 1.442695, %v3372_v15 }
 0x2bd   : > { %v2966_v27 = vpop.eup %1698  ;;  %v1036_v58 = vadd.f32 %v2863_v12, %v1035_v30  ;;  %1718 = vpow2.f32 %v921_v28  ;;  %v3373_v28 = vsub.f32 %v3333_v26, %v2677_v8  ;;  %v3378_v26 = vsub.f32 %v3338_v41, %v2677_v8 }
 0x2be   : > { %v2974_v42 = vpop.eup %1700  ;;  %1720 = vpow2.f32 %v925_v7  ;;  %v3374_v7 = vsub.f32 %v3334_v0, %v2677_v8  ;;  %v3377_v0 = vsub.f32 %v3337_v24, %v2677_v8  ;;  %v3381_v41 = vsub.f32 %v3341_v25, %v2677_v8 }
 0x2bf   : > { %v2979_v46 = vpop.eup %1702  ;;  %v1037_v23 = vadd.f32 %v2869_v50, %v1036_v58  ;;  %1722 = vpow2.f32 %v929_v62  ;;  %v945_v35 = vmul.f32 1.442695, %v3373_v28  ;;  %v3375_v62 = vsub.f32 %v3335_v52, %v2677_v8 }
 0x2c0   : > { %v2987_v43 = vpop.eup %1704  ;;  %1724 = vpow2.f32 %v933_v63  ;;  %v949_v45 = vmul.f32 1.442695, %v3374_v7  ;;  %v3376_v63 = vsub.f32 %v3336_v60, %v2677_v8  ;;  %v961_v7 = vmul.f32 1.442695, %v3377_v0 }
 0x2c1   : > { %v1707_v15 = vpop.eup %1706  ;;  %v1038_v4 = vadd.f32 %v2874_v20, %v1037_v23  ;;  %1726 = vpow2.f32 %v937_v34  ;;  %v953_v58 = vmul.f32 1.442695, %v3375_v62  ;;  %v3379_v60 = vsub.f32 %v3339_v37, %v2677_v8 }
 0x2c2   : > { %v1709_v28 = vpop.eup %1708  ;;  %1728 = vpow2.f32 %v941_v40  ;;  %v957_v30 = vmul.f32 1.442695, %v3376_v63  ;;  %v965_v40 = vmul.f32 1.442695, %v3378_v26  ;;  %v977_v26 = vmul.f32 1.442695, %v3381_v41 }
 0x2c3   : > { %v1711_v19 = vpop.eup %1710  ;;  %v1039_v23 = vadd.f32 %v2880_v54, %v1038_v4  ;;  %1730 = vpow2.f32 %v945_v35  ;;  %v1060_v34 = vadd.f32 %v1709_v28, %v1707_v15  ;;  %v1436_v52 = vpack.c.bf16 %v1709_v28, %v1707_v15 }
 0x2c4   : > { %v1713_v62 = vpop.eup %1712  ;;  %1732 = vpow2.f32 %v949_v45  ;;  %v969_v63 = vmul.f32 1.442695, %v3379_v60  ;;  %v3380_v45 = vsub.f32 %v3340_v56, %v2677_v8  ;;  %v3382_v37 = vpack.c.bf16 %v2769_v33, %v2761_v17 }
 0x2c5   : > { %v1715_v20 = vpop.eup %1714  ;;  %v1040_v24 = vadd.f32 %v2885_v61, %v1039_v23  ;;  %1734 = vpow2.f32 %v953_v58  ;;  %v1061_v0 = vadd.f32 %v1711_v19, %v1060_v34  ;;  %1437 = vmatprep.subr.bf16.mxu1 %v1436_v52  ;;  %v1440_v4 = vpack.c.bf16 %v1713_v62, %v1711_v19 }
 0x2c6   : > { %v1717_v35 = vpop.eup %1716  ;;  %1736 = vpow2.f32 %v957_v30  ;;  %v973_v15 = vmul.f32 1.442695, %v3380_v45  ;;  %1439 = vmatpush1.bf16.msra.mxu1 %v3382_v37  ;;  %v3383_v56 = vsub.f32 %v3342_v21, %v2677_v8  ;;  %v3384_v25 = vsub.f32 %v3343_v32, %v2677_v8  ;;  %v3389_v37 = vld [vmem:[#allocation37_spill] sm:$0xff] }
 0x2c7   : > { %v1719_v28 = vpop.eup %1718  ;;  %v1041_v58 = vadd.f32 %v2891_v38, %v1040_v24  ;;  %1738 = vpow2.f32 %v961_v7  ;;  %v1062_v23 = vadd.f32 %v1713_v62, %v1061_v0  ;;  %1441 = vmatprep.subr.bf16.mxu1 %v1440_v4  ;;  %v1444_v19 = vpack.c.bf16 %v1717_v35, %v1715_v20 }
 0x2c8   : > { %v1721_v30 = vpop.eup %1720  ;;  %1740 = vpow2.f32 %v965_v40  ;;  %v981_v34 = vmul.f32 1.442695, %v3383_v56  ;;  %v985_v52 = vmul.f32 1.442695, %v3384_v25  ;;  %v3385_v62 = vsub.f32 %v3344_v9, %v2677_v8 }
 0x2c9   : > { %v1723_v60 = vpop.eup %1722  ;;  %v1042_v17 = vadd.f32 %v2899_v44, %v1041_v58  ;;  %1742 = vpow2.f32 %v969_v63  ;;  %v1063_v33 = vadd.f32 %v1715_v20, %v1062_v23  ;;  %v1448_v24 = vpack.c.bf16 %v1721_v30, %v1719_v28 }
 0x2ca   : > { %v1725_v7 = vpop.eup %1724  ;;  %1744 = vpow2.f32 %v973_v15  ;;  %v989_v40 = vmul.f32 1.442695, %v3385_v62  ;;  %v3386_v21 = vsub.f32 %v3345_v16, %v2677_v8  ;;  %v3387_v32 = vpack.c.bf16 %v2785_v48, %v2777_v53 }
 0x2cb   : > { %v1727_v4 = vpop.eup %1726  ;;  %v1043_v45 = vadd.f32 %v2908_v51, %v1042_v17  ;;  %1746 = vpow2.f32 %v977_v26  ;;  %v1064_v20 = vadd.f32 %v1717_v35, %v1063_v33  ;;  %v1452_v63 = vpack.c.bf16 %v1725_v7, %v1723_v60 }
 0x2cc   : > { %v993_v0 = vmul.f32 1.442695, %v3386_v21  ;;  %1443 = vmatpush1.bf16.msra.mxu1 %v3387_v32  ;;  %v1729_v15 = vpop.eup %1728  ;;  %1748 = vpow2.f32 %v981_v34  ;;  %v3388_v9 = vsub.f32 %v3346_v2, %v2677_v8  ;;  %v3390_v16 = vsub.f32 %v3389_v37, %v2677_v8  ;;  %v3392_v34 = vld [vmem:[#allocation39_spill] sm:$0xff] }
 0x2cd   : > { %1445 = vmatprep.subr.bf16.mxu1 %v1444_v19  ;;  %v1731_v23 = vpop.eup %1730  ;;  %v1044_v53 = vadd.f32 %v2919_v39, %v1043_v45  ;;  %1750 = vpow2.f32 %v985_v52  ;;  %v1065_v48 = vadd.f32 %v1719_v28, %v1064_v20  ;;  %v1456_v56 = vpack.c.bf16 %v1729_v15, %v1727_v4 }
 0x2ce   : > { %v997_v41 = vmul.f32 1.442695, %v3388_v9  ;;  %v1001_v58 = vmul.f32 1.442695, %v3390_v16  ;;  %v1733_v26 = vpop.eup %1732  ;;  %1752 = vpow2.f32 %v989_v40  ;;  %v3391_v35 = vsub.f32 %v3348_v36, %v2677_v8 }
 0x2cf   : > { %v3393_v2 = vsub.f32 %v3392_v34, %v2677_v8  ;;  %v3394_v17 = vpack.c.bf16 %v2800_v29, %v2793_v49  ;;  %v1735_v33 = vpop.eup %1734  ;;  %v1045_v62 = vadd.f32 %v2928_v1, %v1044_v53  ;;  %1754 = vpow2.f32 %v993_v0 }
 0x2d0   : > { %v1005_v19 = vmul.f32 1.442695, %v3391_v35  ;;  %v1066_v28 = vadd.f32 %v1721_v30, %v1065_v48  ;;  %v1460_v52 = vpack.c.bf16 %v1733_v26, %v1731_v23  ;;  %v1737_v40 = vpop.eup %1736  ;;  %1756 = vpow2.f32 %v997_v41  ;;  %v3397_v30 = vld [vmem:[#allocation42_spill] sm:$0xff] }
 0x2d1   : > { %v1009_v25 = vmul.f32 1.442695, %v3393_v2  ;;  %1447 = vmatpush1.bf16.msra.mxu1 %v3394_v17  ;;  %v3395_v36 = vsub.f32 %v3350_v14, %v2677_v8  ;;  %v3396_v32 = vsub.f32 %v3351_v57, %v2677_v8  ;;  %v1739_v20 = vpop.eup %1738  ;;  %v1046_v29 = vadd.f32 %v2936_v47, %v1045_v62 }
 0x2d2   : > { %1449 = vmatprep.subr.bf16.mxu1 %v1448_v24  ;;  %1758 = vpow2.f32 %v1001_v58  ;;  %v1067_v49 = vadd.f32 %v1723_v60, %v1066_v28  ;;  %v1464_v9 = vpack.c.bf16 %v1737_v40, %v1735_v33  ;;  %v1741_v0 = vpop.eup %1740  ;;  %v3398_v24 = vsub.f32 %v3397_v30, %v2677_v8 }
 0x2d3   : > { %v1013_v21 = vmul.f32 1.442695, %v3395_v36  ;;  %v1017_v45 = vmul.f32 1.442695, %v3396_v32  ;;  %1760 = vpow2.f32 %v1005_v19  ;;  %v3399_v14 = vpack.c.bf16 %v2815_v5, %v2808_v13  ;;  %v1743_v37 = vpop.eup %1742 }
 0x2d4   : > { %v1021_v41 = vmul.f32 1.442695, %v3398_v24  ;;  %v1047_v57 = vadd.f32 %v2943_v18, %v1046_v29  ;;  %1762 = vpow2.f32 %v1009_v25  ;;  %v1068_v16 = vadd.f32 %v1725_v7, %v1067_v49  ;;  %v1745_v58 = vpop.eup %1744 }
 0x2d5   : > { %1451 = vmatpush1.bf16.msra.mxu1 %v3399_v14  ;;  %v1468_v53 = vpack.c.bf16 %v1741_v0, %v1739_v20  ;;  %1764 = vpow2.f32 %v1013_v21  ;;  %v1747_v60 = vpop.eup %1746  ;;  %v1472_v8 = vpack.c.bf16 %v1745_v58, %v1743_v37  ;;  %v3400_v5 = vpack.c.bf16 %v2830_v59, %v2823_v6 }
 0x2d6   : > { %1453 = vmatprep.subr.bf16.mxu1 %v1452_v63  ;;  %v1048_v48 = vadd.f32 %v2951_v11, %v1047_v57  ;;  %1766 = vpow2.f32 %v1017_v45  ;;  %v1069_v35 = vadd.f32 %v1727_v4, %v1068_v16  ;;  %v1749_v19 = vpop.eup %1748  ;;  %v3401_v36 = vpack.c.bf16 %v2844_v3, %v2838_v10 }
 0x2d7   : > { %1768 = vpow2.f32 %v1021_v41  ;;  %v1751_v13 = vpop.eup %1750  ;;  %v1476_v63 = vpack.c.bf16 %v1749_v19, %v1747_v60  ;;  %v3403_v57 = vpack.c.bf16 %v2869_v50, %v2863_v12  ;;  %v3407_v12 = vpack.c.bf16 %v2908_v51, %v2899_v44 }
 0x2d8   : > { %v1049_v34 = vadd.f32 %v2958_v31, %v1048_v48  ;;  %v1070_v7 = vadd.f32 %v1729_v15, %v1069_v35  ;;  %v1753_v2 = vpop.eup %1752  ;;  %v3404_v48 = vld [vmem:[#allocation22_spill] sm:$0xff]  ;;  %v3410_v51 = vpack.c.bf16 %v2958_v31, %v2951_v11  ;;  %v333_v31 = vld [vmem:[%s2396_s30 + $0x10] sm:$0xff]  ;;  %v336_v11 = vld [vmem:[%s2396_s30 + $0x28] sm:$0xff] }
 0x2d9   : > { %1455 = vmatpush1.bf16.msra.mxu1 %v3400_v5  ;;  %v1755_v25 = vpop.eup %1754  ;;  %v1480_v28 = vpack.c.bf16 %v1753_v2, %v1751_v13  ;;  %v338_v5 = vld [vmem:[%s2396_s30 + $0x38] sm:$0xff] }
 0x2da   : > { %1457 = vmatprep.subr.bf16.mxu1 %v1456_v56  ;;  %v1050_v17 = vadd.f32 %v2966_v27, %v1049_v34  ;;  %v1071_v62 = vadd.f32 %v1731_v23, %v1070_v7  ;;  %v1757_v4 = vpop.eup %1756  ;;  %v3402_v23 = vpack.c.bf16 %v2857_v55, %v2850_v22  ;;  %v3405_v22 = vpack.c.bf16 %v2880_v54, %v3404_v48 }
 0x2db   : > { %v1484_v32 = vpack.c.bf16 %v1757_v4, %v1755_v25  ;;  %v3408_v54 = vpack.c.bf16 %v2928_v1, %v2919_v39 }
 0x2dc   : > { %v1759_v21 = vpop.eup %1758  ;;  %v1051_v59 = vadd.f32 %v2974_v42, %v1050_v17  ;;  %v1072_v6 = vadd.f32 %v1733_v26, %v1071_v62 }
 0x2dd   : > { %1459 = vmatpush1.bf16.msra.mxu1 %v3401_v36  ;;  %v1761_v15 = vpop.eup %1760 }
 0x2de   : > { %1461 = vmatprep.subr.bf16.mxu1 %v1460_v52  ;;  %v1763_v56 = vpop.eup %1762  ;;  %v1052_v45 = vadd.f32 %v2979_v46, %v1051_v59  ;;  %v1073_v29 = vadd.f32 %v1735_v33, %v1072_v6  ;;  %v1488_v49 = vpack.c.bf16 %v1761_v15, %v1759_v21 }
 0x2df   : > { %v1765_v30 = vpop.eup %1764 }
 0x2e0   : > { %v1767_v24 = vpop.eup %1766  ;;  %v1053_v3 = vadd.f32 %v2987_v43, %v1052_v45  ;;  %v1074_v10 = vadd.f32 %v1737_v40, %v1073_v29  ;;  %v1492_v41 = vpack.c.bf16 %v1765_v30, %v1763_v56  ;;  %v3406_v40 = vpack.c.bf16 %v2891_v38, %v2885_v61 }
 0x2e1   : > { %1463 = vmatpush1.bf16.msra.mxu1 %v3402_v23  ;;  %v1769_v26 = vpop.eup %1768  ;;  %v3409_v38 = vpack.c.bf16 %v2943_v18, %v2936_v47  ;;  %v3412_v18 = vpack.c.bf16 %v2987_v43, %v2979_v46 }
 0x2e2   : > { %1465 = vmatprep.subr.bf16.mxu1 %v1464_v9  ;;  %v1075_v52 = vadd.f32 %v1739_v20, %v1074_v10  ;;  %v1496_v14 = vpack.c.bf16 %v1769_v26, %v1767_v24 }
 0x2e4   : > { %v1076_v33 = vadd.f32 %v1741_v0, %v1075_v52 }
 0x2e5   : > { %1467 = vmatpush1.bf16.msra.mxu1 %v3403_v57 }
 0x2e6   : > { %1469 = vmatprep.subr.bf16.mxu1 %v1468_v53  ;;  %v1077_v16 = vadd.f32 %v1743_v37, %v1076_v33 }
 0x2e8   : > { %v1078_v55 = vadd.f32 %v1745_v58, %v1077_v16  ;;  %v3411_v58 = vpack.c.bf16 %v2974_v42, %v2966_v27  ;;  %v337_v42 = vld [vmem:[%s2396_s30 + $0x30] sm:$0xff]  ;;  %v1054_v27 = vrot.slane %v1053_v3, 4 }
 0x2e9   : > { %1471 = vmatpush1.bf16.msra.mxu1 %v3405_v22 }
 0x2ea   : > { %1473 = vmatprep.subr.bf16.mxu1 %v1472_v8  ;;  %v1079_v35 = vadd.f32 %v1747_v60, %v1078_v55  ;;  %v331_v60 = vld [vmem:[%s2396_s30] sm:$0xff]  ;;  %v334_v8 = vld [vmem:[%s2396_s30 + $0x18] sm:$0xff]  ;;  %v1055_v34 = vadd.f32 %v1054_v27, %v1053_v3 }
 0x2ec   : > { %v1080_v20 = vadd.f32 %v1749_v19, %v1079_v35  ;;  %v335_v19 = vld [vmem:[%s2396_s30 + $0x20] sm:$0xff]  ;;  %v1056_v46 = vrot.slane %v1055_v34, 2 }
 0x2ed   : > { %1475 = vmatpush1.bf16.msra.mxu1 %v3406_v40 }
 0x2ee   : > { %1477 = vmatprep.subr.bf16.mxu1 %v1476_v63  ;;  %v1081_v9 = vadd.f32 %v1751_v13, %v1080_v20  ;;  %v1057_v63 = vadd.f32 %v1056_v46, %v1055_v34 }
 0x2f0   : > { %v1082_v50 = vadd.f32 %v1753_v2, %v1081_v9 }
 0x2f1   : > { %1479 = vmatpush1.bf16.msra.mxu1 %v3407_v12 }
 0x2f2   : > { %1481 = vmatprep.subr.bf16.mxu1 %v1480_v28  ;;  %v1083_v0 = vadd.f32 %v1755_v25, %v1082_v50  ;;  %v1058_v25 = vrot.slane %v1057_v63, 1 }
 0x2f4   : > { %v1084_v37 = vadd.f32 %v1757_v4, %v1083_v0  ;;  %v1059_v62 = vadd.f32 %v1058_v25, %v1057_v63 }
 0x2f5   : > { %1483 = vmatpush1.bf16.msra.mxu1 %v3408_v54 }
 0x2f6   : > { %1485 = vmatprep.subr.bf16.mxu1 %v1484_v32  ;;  %v1085_v61 = vadd.f32 %v1759_v21, %v1084_v37  ;;  %1770 = vrcp.f32 %v1059_v62 }
 0x2f8   : > { %v1086_v53 = vadd.f32 %v1761_v15, %v1085_v61 }
 0x2f9   : > { %1487 = vmatpush1.bf16.msra.mxu1 %v3409_v38 }
 0x2fa   : > { %1489 = vmatprep.subr.bf16.mxu1 %v1488_v49  ;;  %v1087_v44 = vadd.f32 %v1763_v56, %v1086_v53 }
 0x2fc   : > { %v1088_v39 = vadd.f32 %v1765_v30, %v1087_v44 }
 0x2fd   : > { %1491 = vmatpush1.bf16.msra.mxu1 %v3410_v51 }
 0x2fe   : > { %1493 = vmatprep.subr.bf16.mxu1 %v1492_v41  ;;  %v1089_v1 = vadd.f32 %v1767_v24, %v1088_v39 }
 0x300   : > { %v1090_v47 = vadd.f32 %v1769_v26, %v1089_v1  ;;  %v1771_v4 = vpop.eup %1770 }
 0x301   : > { %1495 = vmatpush1.bf16.msra.mxu1 %v3411_v58  ;;  %v1188_v21 = vmul.f32 %v1771_v4, %v1059_v62 }
 0x302   : > { %1497 = vmatprep.subr.bf16.mxu1 %v1496_v14  ;;  %v1091_v13 = vrot.slane %v1090_v47, 4 }
 0x303   : > { %v1190_v6 = vsub.f32 2.0, %v1188_v21 }
 0x304   : > { %v1092_v7 = vadd.f32 %v1091_v13, %v1090_v47 }
 0x305   : > { %1499 = vmatpush1.bf16.msra.mxu1 %v3412_v18  ;;  %v1192_v15 = vmul.f32 %v1771_v4, %v1190_v6 }
 0x306   : > { %v1093_v43 = vrot.slane %v1092_v7, 2 }
 0x308   : > { %1162 = vmatmul.mubr.f32.vlgmr.msra.gmra.mrb[0].mxu1 %v331_v60  ;;  %v1094_v2 = vadd.f32 %v1093_v43, %v1092_v7 }
 0x309   : > { %1167 = vmatprep.mubr.f32.mxu1 %v334_v8 }
 0x30a   : > { %v1095_v17 = vrot.slane %v1094_v2, 1 }
 0x30c   : > { %1168 = vmatmul.mubr.f32.gmra.mrb[2].mxu1 %v333_v31  ;;  %v1096_v28 = vadd.f32 %v1095_v17, %v1094_v2 }
 0x30d   : > { %1173 = vmatprep.mubr.f32.mxu1 %v336_v11 }
 0x30e   : > { %1772 = vrcp.f32 %v1096_v28 }
 0x310   : > { %1174 = vmatmul.mubr.f32.gmra.mrb[4].mxu1 %v335_v19 }
 0x311   : > { %1179 = vmatprep.mubr.f32.mxu1 %v338_v5 }
 0x314   : > { %1180 = vmatmul.mubr.f32.gmra.mrb[6].mxu1 %v337_v42 }
 0x318   : > { %v1773_v36 = vpop.eup %1772 }
 0x319   : > { %v1189_v59 = vmul.f32 %v1773_v36, %v1096_v28 }
 0x31b   : > { %v1191_v32 = vsub.f32 2.0, %v1189_v59 }
 0x31d   : > { %v1193_v45 = vmul.f32 %v1773_v36, %v1191_v32 }
 0x3db   : > { %v1163_v56 = vpop.f32.mrb[0].mxu1 }
 0x3dc   : > { %v1194_v29 = vmul.f32 %v1192_v15, %v1163_v56  ;;  %v1165_v49 = vpop.f32.mrb[1].mxu1 }
 0x3dd   : > { %v1195_v30 = vmul.f32 %v1193_v45, %v1165_v49 }
 0x3de   : > { %1202 = vst [vmem:[%s300_s24] sm:$0xff] %v1194_v29 }
 0x3df   : > { %1203 = vst [vmem:[%s300_s24 + $0x8] sm:$0xff] %v1195_v30  ;;  %v1169_v23 = vpop.f32.mrb[2].mxu1 }
 0x3e0   : > { %v1196_v24 = vmul.f32 %v1192_v15, %v1169_v23  ;;  %v1171_v3 = vpop.f32.mrb[3].mxu1 }
 0x3e1   : > { %v1197_v10 = vmul.f32 %v1193_v45, %v1171_v3 }
 0x3e2   : > { %1204 = vst [vmem:[%s300_s24 + $0x10] sm:$0xff] %v1196_v24 }
 0x3e3   : > { %1205 = vst [vmem:[%s300_s24 + $0x18] sm:$0xff] %v1197_v10  ;;  %v1175_v41 = vpop.f32.mrb[4].mxu1 }
 0x3e4   : > { %v1198_v26 = vmul.f32 %v1192_v15, %v1175_v41  ;;  %v1177_v52 = vpop.f32.mrb[5].mxu1 }
 0x3e5   : > { %v1199_v14 = vmul.f32 %v1193_v45, %v1177_v52 }
 0x3e6   : > { %1206 = vst [vmem:[%s300_s24 + $0x20] sm:$0xff] %v1198_v26 }
 0x3e7   : > { %1207 = vst [vmem:[%s300_s24 + $0x28] sm:$0xff] %v1199_v14  ;;  %v1181_v57 = vpop.f32.mrb[6].mxu1 }
 0x3e8   : > { %v1200_v33 = vmul.f32 %v1192_v15, %v1181_v57  ;;  %v1183_v16 = vpop.f32.mrb[7].mxu1 }
 0x3e9   : > { %v1201_v48 = vmul.f32 %v1193_v45, %v1183_v16 }
 0x3ea   : > { %1208 = vst [vmem:[%s300_s24 + $0x30] sm:$0xff] %v1200_v33 }
 0x3eb   : > { %1209 = vst [vmem:[%s300_s24 + $0x38] sm:$0xff] %v1201_v48 }
 0x3ec   : > { %1879 = shalt.err (!%p1876_p6)
}
 0x3ed   : > { %s1880_s30 = scalar_lea.hbm %s3128_s3, 1024  ;;  %s1884_s24 = scalar_lea.hbm %s3415_s4, 4096 }
 0x3ee   : > { %p1881_p4 = scmp.ne.s32.totalorder %s3128_s3, %s1880_s30  ;;  %p1885_p13 = scmp.lt.u32.totalorder %s3128_s3, %s3415_s4 }
 0x3ef   : > { %p1886_p0 = scmp.lt.u32.totalorder %s1884_s24, %s1880_s30  ;;  %p1888_p11 = scmp.lt.u32.totalorder %s1880_s30, %s3128_s3 }
 0x3f0   : > { %p1882_p2 = pnand %p1881_p4, %p3416_p5 }
 0x3f1   : > { %p1887_p10 = por %p1886_p0, %p1885_p13 }
 0x3f2   : > { %p1883_p9 = pneg %p1882_p2 }
 0x3f3   : > { %p1889_p8 = por %p1888_p11, %p1887_p10 }
 0x3f5   : > { %p1890_p1 = pnand %p1889_p8, %p1883_p9 }
 0x3f7   : > { %1893 = shalt.err (!%p1890_p1)
}
 0x3f8   : > { %s2029_s15 = smov 256   ;;  %s2030_s11 = smov 16  }
 0x3f9   : > { %1507 = dma.vmem_to_hbm [thread:$0]  (%p3416_p5), %s3123_s12, 1024, %s3128_s3, %s1211_s1, %s2029_s15, %s2029_s15, %s2030_s11  }
 0x3fa PF: > { %p1524_p3 = scmp.ge.s32.totalorder %s2020_s25, 2  ;;  %s1242_s21 = sand.u32 1, %s1992_s18  }
 0x3fb   : > { %p3417_p12 = scmp.ne.s32.totalorder %s3295_s5, 0  ;;  %s1243_s9 = scalar_lea.sflag [#allocation4], %s1242_s21 }
 0x3fd   : > { %p1520_p7 = pnand %p1524_p3, %p3417_p12 }
 0x3ff   : > { %1963 = dma.done.wait (!%p1520_p7), %s1243_s9, 1024  }
 0x400   : > { %1965 = vsyncadd (!%p1520_p7), %s1243_s9, 4294966272  ;;  %s22_s25 = sadd.s32 1, %s2020_s25   ;;  %s3419_s15 = sld [smem:[#allocation13_spill]] }
 0x401   : > { %p3159_p6 = scmp.ge.s32.totalorder %s22_s25, 6   ;;  %s3420_s7 = sld [smem:[#allocation21_spill]] }
 0x402   : > { %s3421_s10 = smov %s2247_s16  ;;  %s3422_s21 = sld [smem:[#allocation16_spill]] }
 0x403   : > { %s3423_s22 = sld [smem:[#allocation17_spill]]  ;;  %s3424_s23 = sld [smem:[#allocation18_spill]] }
 0x404   : > { %s3425_s24 = sld [smem:[#allocation19_spill]]  ;;  %s3426_s12 = smov %s1972_s13 }
 0x405   : > { %s3427_s13 = smov %s1976_s14  ;;  %s3428_s14 = smov %s2315_s29 }
 0x406   : > { %s3429_s16 = smov %s1988_s17  ;;  %s3431_s18 = smov %s1996_s19 }
 0x407   : > { %s3430_s17 = smov %s3420_s7  ;;  %s3432_s19 = smov %s2000_s20 }
 0x408   : > { %s3433_s20 = smov %s3421_s10  ;;  %21 = sbr.rel (!%p3159_p6) target bundleno = 16 (0x10), region = 101 }
 0x40f   :  { %1248 = vsyncpa [#allocation3], 1 }
 0x410   :  { %1250 = vsyncpa [#allocation3 + $0x1], 1 }
 0x411   :  { %1251 = vsyncpa [#allocation6], 1 }
 0x412   :  { %1253 = vsyncpa [#allocation6 + $0x1], 1 }
 0x413   :  { %1254 = vsyncpa [#allocation4], 1 }
 0x414   :  { %1256 = vsyncpa [#allocation4 + $0x1], 1 }

</bundles_post_ra>
